<compile_context>
chip_gen: v7x
topology: tpu7x:2x2x1
jax: 0.10.0
libtpu: 0.0.40
codegen_flags: <defaults>
</compile_context>

<pallas_src>
import jax
import jax.numpy as jnp
import numpy as np
from jax.experimental import pallas as pl
from jax.experimental.pallas import tpu as pltpu


# ----------------------------- Pallas kernels ------------------------------

def conv_pool_kernel(p_ref, w_ref, b_ref, o_ref):
    """Fused conv(im2col GEMM) + 2x2 max-pool + bias + ReLU.

    p_ref : (4, TM, F) bf16  -- im2col rows for the 4 pool-window offsets
    w_ref : (F, Cout)  bf16  -- flattened conv weight, rows ordered (kh,kw,cin)
    b_ref : (1, Cout)  f32
    o_ref : (TM, Cout) bf16  -- pooled + activated output tile
    """
    w = w_ref[...]
    # 4 small GEMMs with a running max (rows are independent, so garbage rows
    # in a masked last block cannot contaminate valid rows).
    y0 = jnp.dot(p_ref[0], w, preferred_element_type=jnp.float32)
    y1 = jnp.dot(p_ref[1], w, preferred_element_type=jnp.float32)
    y2 = jnp.dot(p_ref[2], w, preferred_element_type=jnp.float32)
    y3 = jnp.dot(p_ref[3], w, preferred_element_type=jnp.float32)
    m = jnp.maximum(jnp.maximum(y0, y1), jnp.maximum(y2, y3))
    # Bias + ReLU applied once, after the max (== relu-then-pool).
    o_ref[...] = jnp.maximum(m + b_ref[...], 0.0).astype(o_ref.dtype)


def fc_stack_kernel(x_ref, w1_ref, b1_ref, w2_ref, b2_ref, w3_ref, b3_ref,
                    o_ref):
    """Fused fc1(ReLU) -> fc2(ReLU) -> fc3; intermediates stay in VMEM."""
    h = jnp.dot(x_ref[...], w1_ref[...], preferred_element_type=jnp.float32)
    h = jnp.maximum(h + b1_ref[...], 0.0).astype(jnp.bfloat16)
    h = jnp.dot(h, w2_ref[...], preferred_element_type=jnp.float32)
    h = jnp.maximum(h + b2_ref[...], 0.0).astype(jnp.bfloat16)
    y = jnp.dot(h, w3_ref[...], preferred_element_type=jnp.float32)
    o_ref[...] = y + b3_ref[...]


# ------------------------------- glue helpers ------------------------------

def _round_up(x, m):
    return (x + m - 1) // m * m


def _pick_row_tile(M, tm_max=512):
    """Row-tile size (multiple of 16 for bf16 sublane packing).

    Prefers >=2 grid steps once M is large enough to split, so v7x's second
    TensorCore gets work even at small batch.  Ragged tails are handled by
    the pl.cdiv grid + masked last block (no HBM pad copy).
    """
    if M <= 32:
        return M                      # single full-extent block (legal)
    if M <= tm_max:
        return min(_round_up(M, 16), _round_up((M + 1) // 2, 16))
    return tm_max


def _pool_offset_patches(x, K):
    """(4, N*Hp*Wp, K*K*C) slab of im2col rows, one slab per 2x2 pool offset.

    Built directly from strided slices of x (already bf16): one XLA fusion
    that reads x and writes the slab once -- no intermediate `patches`
    tensor and no pad copy.  Feature order inside a row is (kh, kw, c).
    """
    N, H, W, C = x.shape
    Ho, Wo = H - K + 1, W - K + 1
    Hp, Wp = Ho // 2, Wo // 2
    mats = []
    for di in range(2):
        for dj in range(2):
            cols = [x[:, di + kh: di + kh + 2 * Hp: 2,
                        dj + kw: dj + kw + 2 * Wp: 2, :]
                    for kh in range(K) for kw in range(K)]
            mats.append(jnp.concatenate(cols, axis=-1)
                        .reshape(N * Hp * Wp, K * K * C))
    return jnp.stack(mats, axis=0), (N, Hp, Wp)       # (4, M, F)


def conv_relu_pool(x, w, b, K, tm_max=512):
    """x: (N,H,W,Cin) NHWC; w: (Cout,Cin,KH,KW) torch layout; b: (Cout,)."""
    Cout, Cin = w.shape[0], w.shape[1]
    x = x.astype(jnp.bfloat16)                          # slab materializes bf16
    p_all, (N, Hp, Wp) = _pool_offset_patches(x, K)     # (4, M, F) bf16
    M, F = p_all.shape[1], p_all.shape[2]
    TM = _pick_row_tile(M, tm_max)

    # weight rows must match im2col feature order (kh, kw, cin)
    wm = jnp.transpose(w, (2, 3, 1, 0)).reshape(K * K * Cin, Cout)
    wm = wm.astype(jnp.bfloat16)
    bm = b.reshape(1, Cout).astype(jnp.float32)

    grid = (pl.cdiv(M, TM),)
    cost = pl.CostEstimate(
        flops=int(2 * 4 * M * F * Cout),
        transcendentals=0,
        bytes_accessed=int(4 * M * F * 2 + F * Cout * 2
                           + Cout * 4 + M * Cout * 2))
    out = pl.pallas_call(
        conv_pool_kernel,
        out_shape=jax.ShapeDtypeStruct((M, Cout), jnp.bfloat16),
        grid=grid,
        in_specs=[
            pl.BlockSpec((4, TM, F), lambda i: (0, i, 0)),
            pl.BlockSpec((F, Cout), lambda i: (0, 0)),   # grid-invariant
            pl.BlockSpec((1, Cout), lambda i: (0, 0)),   # grid-invariant
        ],
        out_specs=pl.BlockSpec((TM, Cout), lambda i: (i, 0)),
        compiler_params=pltpu.CompilerParams(
            dimension_semantics=("parallel",),
            vmem_limit_bytes=32 * 1024 * 1024),
        cost_estimate=cost,
    )(p_all, wm, bm)
    return out.reshape(N, Hp, Wp, Cout)


def fc_stack(x_nhwc, params, tn_max=256):
    """Fused fc1+fc2+fc3 on the (N,Hc,Wc,C) conv output, gridded over batch."""
    N, Hc, Wc, C = x_nhwc.shape
    feat = Hc * Wc * C

    # Fold torch's NCHW flatten (x.view(-1, C*Hc*Wc)) into fc1's weight
    # columns: column j of the permuted weight multiplies NHWC feature j.
    perm = np.arange(feat).reshape(C, Hc, Wc).transpose(1, 2, 0).reshape(-1)
    w1 = params["fw1"][:, perm].T.astype(jnp.bfloat16)     # (feat, 120)
    b1 = params["fb1"].reshape(1, -1).astype(jnp.float32)
    w2 = params["fw2"].T.astype(jnp.bfloat16)               # (120, 84)
    b2 = params["fb2"].reshape(1, -1).astype(jnp.float32)
    w3 = params["fw3"].T.astype(jnp.bfloat16)               # (84, 10)
    b3 = params["fb3"].reshape(1, -1).astype(jnp.float32)

    x = x_nhwc.reshape(N, feat).astype(jnp.bfloat16)        # NHWC flatten
    n_out = w3.shape[1]
    TN = N if N <= tn_max else tn_max                       # TN mult of 8 or ==N
    grid = (pl.cdiv(N, TN),)

    def inv(shape):                                         # grid-invariant block
        nd = len(shape)
        return pl.BlockSpec(shape, lambda i, _nd=nd: (0,) * _nd)

    cost = pl.CostEstimate(
        flops=int(2 * N * (feat * w1.shape[1]
                           + w2.shape[0] * w2.shape[1]
                           + w3.shape[0] * n_out)),
        transcendentals=0,
        bytes_accessed=int(N * feat * 2
                           + (w1.size + w2.size + w3.size) * 2
                           + N * n_out * 4))
    return pl.pallas_call(
        fc_stack_kernel,
        out_shape=jax.ShapeDtypeStruct((N, n_out), jnp.float32),
        grid=grid,
        in_specs=[pl.BlockSpec((TN, feat), lambda i: (i, 0)),
                  inv(w1.shape), inv(b1.shape),
                  inv(w2.shape), inv(b2.shape),
                  inv(w3.shape), inv(b3.shape)],
        out_specs=pl.BlockSpec((TN, n_out), lambda i: (i, 0)),
        compiler_params=pltpu.CompilerParams(
            dimension_semantics=("parallel",),
            vmem_limit_bytes=32 * 1024 * 1024),
        cost_estimate=cost,
    )(x, w1, b1, w2, b2, w3, b3)


# ------------------------------ forward pass -------------------------------

def convnet_forward(x_nchw, params):
    # layout: NCHW -> NHWC for the conv stages.
    x = jnp.transpose(x_nchw, (0, 2, 3, 1))                       # (N,32,32,3)
    x = conv_relu_pool(x, params["w1"], params["b1"], K=5)        # (N,14,14,6)
    x = conv_relu_pool(x, params["w2"], params["b2"], K=5)        # (N,5,5,16)
    return fc_stack(x, params)                                    # (N,10)


# ------------------------- params & pure-JAX reference ---------------------

def init_params(key):
    ks = jax.random.split(key, 10)

    def u(k, shape, fan_in):
        bound = fan_in ** -0.5
        return jax.random.uniform(k, shape, jnp.float32, -bound, bound)

    return {
        "w1": u(ks[0], (6, 3, 5, 5), 3 * 5 * 5),
        "b1": u(ks[1], (6,), 3 * 5 * 5),
        "w2": u(ks[2], (16, 6, 5, 5), 6 * 5 * 5),
        "b2": u(ks[3], (16,), 6 * 5 * 5),
        "fw1": u(ks[4], (120, 400), 400),
        "fb1": u(ks[5], (120,), 400),
        "fw2": u(ks[6], (84, 120), 120),
        "fb2": u(ks[7], (84,), 120),
        "fw3": u(ks[8], (10, 84), 84),
        "fb3": u(ks[9], (10,), 84),
    }


def torch_reference(x, p):
    """Plain-JAX f32 replica of the PyTorch forward (NCHW throughout)."""
    def conv(x, w, b):
        y = jax.lax.conv_general_dilated(
            x, w, (1, 1), "VALID",
            dimension_numbers=("NCHW", "OIHW", "NCHW"))
        return y + b.reshape(1, -1, 1, 1)

    def pool(x):
        return jax.lax.reduce_window(x, -jnp.inf, jax.lax.max,
                                     (1, 1, 2, 2), (1, 1, 2, 2), "VALID")

    x = pool(jax.nn.relu(conv(x, p["w1"], p["b1"])))
    x = pool(jax.nn.relu(conv(x, p["w2"], p["b2"])))
    x = x.reshape(x.shape[0], -1)
    x = jax.nn.relu(x @ p["fw1"].T + p["fb1"])
    x = jax.nn.relu(x @ p["fw2"].T + p["fb2"])
    return x @ p["fw3"].T + p["fb3"]


# ---------------------------------- main ------------------------------------

if __name__ == "__main__":
    key = jax.random.PRNGKey(0)
    pkey, xkey = jax.random.split(key)
    params = init_params(pkey)
    x = jax.random.normal(xkey, (2, 3, 32, 32), jnp.float32)  # NCHW like torch

    out = jax.jit(convnet_forward)(x, params)
    out = jax.block_until_ready(out)
    assert out.shape == (2, 10), out.shape

    ref = torch_reference(x, params)
    # bf16 MXU operands / bf16 inter-layer activations (f32 accumulation) ->
    # slightly looser tolerance than a pure-f32 comparison.
    np.testing.assert_allclose(np.asarray(out), np.asarray(ref),
                               rtol=2e-2, atol=2e-2)
    print("KERNEL_OK")
</pallas_src>

<mosaic_0001>
module attributes {stable_mosaic.version = 11 : i64} {
  func.func @conv_pool_kernel(%arg0: i32, %arg1: memref<4x208x75xbf16, #tpu.memory_space<vmem>>, %arg2: memref<75x6xbf16, #tpu.memory_space<vmem>>, %arg3: memref<1x6xf32, #tpu.memory_space<vmem>>, %arg4: memref<208x6xbf16, #tpu.memory_space<vmem>>) attributes {dimension_semantics = [#tpu.dimension_semantics<parallel>], iteration_bounds = array<i64: 2>, scalar_prefetch = 0 : i64, scratch_operands = 0 : i64, tpu.core_type = #tpu.core_type<tc>, window_params = [{transform_indices = @transform_0, window_bounds = array<i64: 4, 208, 75>}, {pipeline_mode = #tpu.pipeline_mode<synchronous>, transform_indices = @transform_1, window_bounds = array<i64: 75, 6>}, {pipeline_mode = #tpu.pipeline_mode<synchronous>, transform_indices = @transform_2, window_bounds = array<i64: 1, 6>}, {transform_indices = @transform_3, window_bounds = array<i64: 208, 6>}]} {
    %c0 = arith.constant 0 : index
    %c0_0 = arith.constant 0 : index
    %0 = vector.load %arg2[%c0, %c0_0] : memref<75x6xbf16, #tpu.memory_space<vmem>>, vector<75x6xbf16>
    %c0_1 = arith.constant 0 : index
    %c0_2 = arith.constant 0 : index
    %c0_3 = arith.constant 0 : index
    %1 = vector.load %arg1[%c0_1, %c0_2, %c0_3] : memref<4x208x75xbf16, #tpu.memory_space<vmem>>, vector<1x208x75xbf16>
    %2 = vector.shape_cast %1 : vector<1x208x75xbf16> to vector<208x75xbf16>
    %cst = arith.constant dense<0.000000e+00> : vector<208x6xf32>
    %3 = tpu.matmul %2, %0, %cst {dimension_numbers = #tpu.dot_dimension_numbers<[1], [0], [0], [1], [0, 0, 1, 1], [], []>} : vector<208x75xbf16>, vector<75x6xbf16>, vector<208x6xf32> -> vector<208x6xf32>
    %c1 = arith.constant 1 : index
    %c0_4 = arith.constant 0 : index
    %c0_5 = arith.constant 0 : index
    %4 = vector.load %arg1[%c1, %c0_4, %c0_5] : memref<4x208x75xbf16, #tpu.memory_space<vmem>>, vector<1x208x75xbf16>
    %5 = vector.shape_cast %4 : vector<1x208x75xbf16> to vector<208x75xbf16>
    %cst_6 = arith.constant dense<0.000000e+00> : vector<208x6xf32>
    %6 = tpu.matmul %5, %0, %cst_6 {dimension_numbers = #tpu.dot_dimension_numbers<[1], [0], [0], [1], [0, 0, 1, 1], [], []>} : vector<208x75xbf16>, vector<75x6xbf16>, vector<208x6xf32> -> vector<208x6xf32>
    %c2 = arith.constant 2 : index
    %c0_7 = arith.constant 0 : index
    %c0_8 = arith.constant 0 : index
    %7 = vector.load %arg1[%c2, %c0_7, %c0_8] : memref<4x208x75xbf16, #tpu.memory_space<vmem>>, vector<1x208x75xbf16>
    %8 = vector.shape_cast %7 : vector<1x208x75xbf16> to vector<208x75xbf16>
    %cst_9 = arith.constant dense<0.000000e+00> : vector<208x6xf32>
    %9 = tpu.matmul %8, %0, %cst_9 {dimension_numbers = #tpu.dot_dimension_numbers<[1], [0], [0], [1], [0, 0, 1, 1], [], []>} : vector<208x75xbf16>, vector<75x6xbf16>, vector<208x6xf32> -> vector<208x6xf32>
    %c3 = arith.constant 3 : index
    %c0_10 = arith.constant 0 : index
    %c0_11 = arith.constant 0 : index
    %10 = vector.load %arg1[%c3, %c0_10, %c0_11] : memref<4x208x75xbf16, #tpu.memory_space<vmem>>, vector<1x208x75xbf16>
    %11 = vector.shape_cast %10 : vector<1x208x75xbf16> to vector<208x75xbf16>
    %cst_12 = arith.constant dense<0.000000e+00> : vector<208x6xf32>
    %12 = tpu.matmul %11, %0, %cst_12 {dimension_numbers = #tpu.dot_dimension_numbers<[1], [0], [0], [1], [0, 0, 1, 1], [], []>} : vector<208x75xbf16>, vector<75x6xbf16>, vector<208x6xf32> -> vector<208x6xf32>
    %13 = arith.maximumf %3, %6 : vector<208x6xf32>
    %14 = arith.maximumf %9, %12 : vector<208x6xf32>
    %15 = arith.maximumf %13, %14 : vector<208x6xf32>
    %c0_13 = arith.constant 0 : index
    %c0_14 = arith.constant 0 : index
    %16 = vector.load %arg3[%c0_13, %c0_14] : memref<1x6xf32, #tpu.memory_space<vmem>>, vector<1x6xf32>
    %17 = vector.broadcast %16 : vector<1x6xf32> to vector<208x6xf32>
    %18 = arith.addf %15, %17 : vector<208x6xf32>
    %cst_15 = arith.constant 0.000000e+00 : f32
    %19 = vector.broadcast %cst_15 : f32 to vector<208x6xf32>
    %20 = arith.maximumf %18, %19 : vector<208x6xf32>
    %21 = arith.truncf %20 : vector<208x6xf32> to vector<208x6xbf16>
    %c0_16 = arith.constant 0 : index
    %c0_17 = arith.constant 0 : index
    %22 = vector.load %arg4[%c0_16, %c0_17] : memref<208x6xbf16, #tpu.memory_space<vmem>>, vector<208x6xbf16>
    tpu.vector_store %arg4[%c0_16, %c0_17], %21 {strides = array<i32>} : memref<208x6xbf16, #tpu.memory_space<vmem>>, vector<208x6xbf16>,
    return
  }
  func.func @transform_0(%arg0: i32) -> (i32, i32, i32) {
    %c0_i32 = arith.constant 0 : i32
    %c0_i32_0 = arith.constant 0 : i32
    %c0_i32_1 = arith.constant 0 : i32
    return %c0_i32, %arg0, %c0_i32_0 : i32, i32, i32
  }
  func.func @transform_1(%arg0: i32) -> (i32, i32) {
    %c0_i32 = arith.constant 0 : i32
    %c0_i32_0 = arith.constant 0 : i32
    %c0_i32_1 = arith.constant 0 : i32
    return %c0_i32, %c0_i32_0 : i32, i32
  }
  func.func @transform_2(%arg0: i32) -> (i32, i32) {
    %c0_i32 = arith.constant 0 : i32
    %c0_i32_0 = arith.constant 0 : i32
    %c0_i32_1 = arith.constant 0 : i32
    return %c0_i32, %c0_i32_0 : i32, i32
  }
  func.func @transform_3(%arg0: i32) -> (i32, i32) {
    %c0_i32 = arith.constant 0 : i32
    %c0_i32_0 = arith.constant 0 : i32
    return %arg0, %c0_i32 : i32, i32
  }
}

module attributes {stable_mosaic.version = 11 : i64} {
  func.func @conv_pool_kernel(%arg0: i32, %arg1: memref<4x32x150xbf16, #tpu.memory_space<vmem>>, %arg2: memref<150x16xbf16, #tpu.memory_space<vmem>>, %arg3: memref<1x16xf32, #tpu.memory_space<vmem>>, %arg4: memref<32x16xbf16, #tpu.memory_space<vmem>>) attributes {dimension_semantics = [#tpu.dimension_semantics<parallel>], iteration_bounds = array<i64: 2>, scalar_prefetch = 0 : i64, scratch_operands = 0 : i64, tpu.core_type = #tpu.core_type<tc>, window_params = [{transform_indices = @transform_0, window_bounds = array<i64: 4, 32, 150>}, {pipeline_mode = #tpu.pipeline_mode<synchronous>, transform_indices = @transform_1, window_bounds = array<i64: 150, 16>}, {pipeline_mode = #tpu.pipeline_mode<synchronous>, transform_indices = @transform_2, window_bounds = array<i64: 1, 16>}, {transform_indices = @transform_3, window_bounds = array<i64: 32, 16>}]} {
    %c0 = arith.constant 0 : index
    %c0_0 = arith.constant 0 : index
    %0 = vector.load %arg2[%c0, %c0_0] : memref<150x16xbf16, #tpu.memory_space<vmem>>, vector<150x16xbf16>
    %c0_1 = arith.constant 0 : index
    %c0_2 = arith.constant 0 : index
    %c0_3 = arith.constant 0 : index
    %1 = vector.load %arg1[%c0_1, %c0_2, %c0_3] : memref<4x32x150xbf16, #tpu.memory_space<vmem>>, vector<1x32x150xbf16>
    %2 = vector.shape_cast %1 : vector<1x32x150xbf16> to vector<32x150xbf16>
    %cst = arith.constant dense<0.000000e+00> : vector<32x16xf32>
    %3 = tpu.matmul %2, %0, %cst {dimension_numbers = #tpu.dot_dimension_numbers<[1], [0], [0], [1], [0, 0, 1, 1], [], []>} : vector<32x150xbf16>, vector<150x16xbf16>, vector<32x16xf32> -> vector<32x16xf32>
    %c1 = arith.constant 1 : index
    %c0_4 = arith.constant 0 : index
    %c0_5 = arith.constant 0 : index
    %4 = vector.load %arg1[%c1, %c0_4, %c0_5] : memref<4x32x150xbf16, #tpu.memory_space<vmem>>, vector<1x32x150xbf16>
    %5 = vector.shape_cast %4 : vector<1x32x150xbf16> to vector<32x150xbf16>
    %cst_6 = arith.constant dense<0.000000e+00> : vector<32x16xf32>
    %6 = tpu.matmul %5, %0, %cst_6 {dimension_numbers = #tpu.dot_dimension_numbers<[1], [0], [0], [1], [0, 0, 1, 1], [], []>} : vector<32x150xbf16>, vector<150x16xbf16>, vector<32x16xf32> -> vector<32x16xf32>
    %c2 = arith.constant 2 : index
    %c0_7 = arith.constant 0 : index
    %c0_8 = arith.constant 0 : index
    %7 = vector.load %arg1[%c2, %c0_7, %c0_8] : memref<4x32x150xbf16, #tpu.memory_space<vmem>>, vector<1x32x150xbf16>
    %8 = vector.shape_cast %7 : vector<1x32x150xbf16> to vector<32x150xbf16>
    %cst_9 = arith.constant dense<0.000000e+00> : vector<32x16xf32>
    %9 = tpu.matmul %8, %0, %cst_9 {dimension_numbers = #tpu.dot_dimension_numbers<[1], [0], [0], [1], [0, 0, 1, 1], [], []>} : vector<32x150xbf16>, vector<150x16xbf16>, vector<32x16xf32> -> vector<32x16xf32>
    %c3 = arith.constant 3 : index
    %c0_10 = arith.constant 0 : index
    %c0_11 = arith.constant 0 : index
    %10 = vector.load %arg1[%c3, %c0_10, %c0_11] : memref<4x32x150xbf16, #tpu.memory_space<vmem>>, vector<1x32x150xbf16>
    %11 = vector.shape_cast %10 : vector<1x32x150xbf16> to vector<32x150xbf16>
    %cst_12 = arith.constant dense<0.000000e+00> : vector<32x16xf32>
    %12 = tpu.matmul %11, %0, %cst_12 {dimension_numbers = #tpu.dot_dimension_numbers<[1], [0], [0], [1], [0, 0, 1, 1], [], []>} : vector<32x150xbf16>, vector<150x16xbf16>, vector<32x16xf32> -> vector<32x16xf32>
    %13 = arith.maximumf %3, %6 : vector<32x16xf32>
    %14 = arith.maximumf %9, %12 : vector<32x16xf32>
    %15 = arith.maximumf %13, %14 : vector<32x16xf32>
    %c0_13 = arith.constant 0 : index
    %c0_14 = arith.constant 0 : index
    %16 = vector.load %arg3[%c0_13, %c0_14] : memref<1x16xf32, #tpu.memory_space<vmem>>, vector<1x16xf32>
    %17 = vector.broadcast %16 : vector<1x16xf32> to vector<32x16xf32>
    %18 = arith.addf %15, %17 : vector<32x16xf32>
    %cst_15 = arith.constant 0.000000e+00 : f32
    %19 = vector.broadcast %cst_15 : f32 to vector<32x16xf32>
    %20 = arith.maximumf %18, %19 : vector<32x16xf32>
    %21 = arith.truncf %20 : vector<32x16xf32> to vector<32x16xbf16>
    %c0_16 = arith.constant 0 : index
    %c0_17 = arith.constant 0 : index
    %22 = vector.load %arg4[%c0_16, %c0_17] : memref<32x16xbf16, #tpu.memory_space<vmem>>, vector<32x16xbf16>
    tpu.vector_store %arg4[%c0_16, %c0_17], %21 {strides = array<i32>} : memref<32x16xbf16, #tpu.memory_space<vmem>>, vector<32x16xbf16>,
    return
  }
  func.func @transform_0(%arg0: i32) -> (i32, i32, i32) {
    %c0_i32 = arith.constant 0 : i32
    %c0_i32_0 = arith.constant 0 : i32
    %c0_i32_1 = arith.constant 0 : i32
    return %c0_i32, %arg0, %c0_i32_0 : i32, i32, i32
  }
  func.func @transform_1(%arg0: i32) -> (i32, i32) {
    %c0_i32 = arith.constant 0 : i32
    %c0_i32_0 = arith.constant 0 : i32
    %c0_i32_1 = arith.constant 0 : i32
    return %c0_i32, %c0_i32_0 : i32, i32
  }
  func.func @transform_2(%arg0: i32) -> (i32, i32) {
    %c0_i32 = arith.constant 0 : i32
    %c0_i32_0 = arith.constant 0 : i32
    %c0_i32_1 = arith.constant 0 : i32
    return %c0_i32, %c0_i32_0 : i32, i32
  }
  func.func @transform_3(%arg0: i32) -> (i32, i32) {
    %c0_i32 = arith.constant 0 : i32
    %c0_i32_0 = arith.constant 0 : i32
    return %arg0, %c0_i32 : i32, i32
  }
}

module attributes {stable_mosaic.version = 11 : i64} {
  func.func @fc_stack_kernel(%arg0: i32, %arg1: memref<2x400xbf16, #tpu.memory_space<vmem>>, %arg2: memref<400x120xbf16, #tpu.memory_space<vmem>>, %arg3: memref<1x120xf32, #tpu.memory_space<vmem>>, %arg4: memref<120x84xbf16, #tpu.memory_space<vmem>>, %arg5: memref<1x84xf32, #tpu.memory_space<vmem>>, %arg6: memref<84x10xbf16, #tpu.memory_space<vmem>>, %arg7: memref<1x10xf32, #tpu.memory_space<vmem>>, %arg8: memref<2x10xf32, #tpu.memory_space<vmem>>) attributes {dimension_semantics = [#tpu.dimension_semantics<parallel>], iteration_bounds = array<i64: 1>, scalar_prefetch = 0 : i64, scratch_operands = 0 : i64, tpu.core_type = #tpu.core_type<tc>, window_params = [{transform_indices = @transform_0, window_bounds = array<i64: 2, 400>}, {pipeline_mode = #tpu.pipeline_mode<synchronous>, transform_indices = @transform_1, window_bounds = array<i64: 400, 120>}, {pipeline_mode = #tpu.pipeline_mode<synchronous>, transform_indices = @transform_2, window_bounds = array<i64: 1, 120>}, {pipeline_mode = #tpu.pipeline_mode<synchronous>, transform_indices = @transform_3, window_bounds = array<i64: 120, 84>}, {pipeline_mode = #tpu.pipeline_mode<synchronous>, transform_indices = @transform_4, window_bounds = array<i64: 1, 84>}, {pipeline_mode = #tpu.pipeline_mode<synchronous>, transform_indices = @transform_5, window_bounds = array<i64: 84, 10>}, {pipeline_mode = #tpu.pipeline_mode<synchronous>, transform_indices = @transform_6, window_bounds = array<i64: 1, 10>}, {transform_indices = @transform_7, window_bounds = array<i64: 2, 10>}]} {
    %c0 = arith.constant 0 : index
    %c0_0 = arith.constant 0 : index
    %0 = vector.load %arg1[%c0, %c0_0] : memref<2x400xbf16, #tpu.memory_space<vmem>>, vector<2x400xbf16>
    %c0_1 = arith.constant 0 : index
    %c0_2 = arith.constant 0 : index
    %1 = vector.load %arg2[%c0_1, %c0_2] : memref<400x120xbf16, #tpu.memory_space<vmem>>, vector<400x120xbf16>
    %cst = arith.constant dense<0.000000e+00> : vector<2x120xf32>
    %2 = tpu.matmul %0, %1, %cst {dimension_numbers = #tpu.dot_dimension_numbers<[1], [0], [0], [1], [0, 0, 1, 1], [], []>} : vector<2x400xbf16>, vector<400x120xbf16>, vector<2x120xf32> -> vector<2x120xf32>
    %c0_3 = arith.constant 0 : index
    %c0_4 = arith.constant 0 : index
    %3 = vector.load %arg3[%c0_3, %c0_4] : memref<1x120xf32, #tpu.memory_space<vmem>>, vector<1x120xf32>
    %4 = vector.broadcast %3 : vector<1x120xf32> to vector<2x120xf32>
    %5 = arith.addf %2, %4 : vector<2x120xf32>
    %cst_5 = arith.constant 0.000000e+00 : f32
    %6 = vector.broadcast %cst_5 : f32 to vector<2x120xf32>
    %7 = arith.maximumf %5, %6 : vector<2x120xf32>
    %8 = arith.truncf %7 : vector<2x120xf32> to vector<2x120xbf16>
    %c0_6 = arith.constant 0 : index
    %c0_7 = arith.constant 0 : index
    %9 = vector.load %arg4[%c0_6, %c0_7] : memref<120x84xbf16, #tpu.memory_space<vmem>>, vector<120x84xbf16>
    %cst_8 = arith.constant dense<0.000000e+00> : vector<2x84xf32>
    %10 = tpu.matmul %8, %9, %cst_8 {dimension_numbers = #tpu.dot_dimension_numbers<[1], [0], [0], [1], [0, 0, 1, 1], [], []>} : vector<2x120xbf16>, vector<120x84xbf16>, vector<2x84xf32> -> vector<2x84xf32>
    %c0_9 = arith.constant 0 : index
    %c0_10 = arith.constant 0 : index
    %11 = vector.load %arg5[%c0_9, %c0_10] : memref<1x84xf32, #tpu.memory_space<vmem>>, vector<1x84xf32>
    %12 = vector.broadcast %11 : vector<1x84xf32> to vector<2x84xf32>
    %13 = arith.addf %10, %12 : vector<2x84xf32>
    %cst_11 = arith.constant 0.000000e+00 : f32
    %14 = vector.broadcast %cst_11 : f32 to vector<2x84xf32>
    %15 = arith.maximumf %13, %14 : vector<2x84xf32>
    %16 = arith.truncf %15 : vector<2x84xf32> to vector<2x84xbf16>
    %c0_12 = arith.constant 0 : index
    %c0_13 = arith.constant 0 : index
    %17 = vector.load %arg6[%c0_12, %c0_13] : memref<84x10xbf16, #tpu.memory_space<vmem>>, vector<84x10xbf16>
    %cst_14 = arith.constant dense<0.000000e+00> : vector<2x10xf32>
    %18 = tpu.matmul %16, %17, %cst_14 {dimension_numbers = #tpu.dot_dimension_numbers<[1], [0], [0], [1], [0, 0, 1, 1], [], []>} : vector<2x84xbf16>, vector<84x10xbf16>, vector<2x10xf32> -> vector<2x10xf32>
    %c0_15 = arith.constant 0 : index
    %c0_16 = arith.constant 0 : index
    %19 = vector.load %arg7[%c0_15, %c0_16] : memref<1x10xf32, #tpu.memory_space<vmem>>, vector<1x10xf32>
    %20 = vector.broadcast %19 : vector<1x10xf32> to vector<2x10xf32>
    %21 = arith.addf %18, %20 : vector<2x10xf32>
    %c0_17 = arith.constant 0 : index
    %c0_18 = arith.constant 0 : index
    %22 = vector.load %arg8[%c0_17, %c0_18] : memref<2x10xf32, #tpu.memory_space<vmem>>, vector<2x10xf32>
    tpu.vector_store %arg8[%c0_17, %c0_18], %21 {strides = array<i32>} : memref<2x10xf32, #tpu.memory_space<vmem>>, vector<2x10xf32>,
    return
  }
  func.func @transform_0(%arg0: i32) -> (i32, i32) {
    %c0_i32 = arith.constant 0 : i32
    %c0_i32_0 = arith.constant 0 : i32
    return %arg0, %c0_i32 : i32, i32
  }
  func.func @transform_1(%arg0: i32) -> (i32, i32) {
    %c0_i32 = arith.constant 0 : i32
    %c0_i32_0 = arith.constant 0 : i32
    %c0_i32_1 = arith.constant 0 : i32
    return %c0_i32, %c0_i32_0 : i32, i32
  }
  func.func @transform_2(%arg0: i32) -> (i32, i32) {
    %c0_i32 = arith.constant 0 : i32
    %c0_i32_0 = arith.constant 0 : i32
    %c0_i32_1 = arith.constant 0 : i32
    return %c0_i32, %c0_i32_0 : i32, i32
  }
  func.func @transform_3(%arg0: i32) -> (i32, i32) {
    %c0_i32 = arith.constant 0 : i32
    %c0_i32_0 = arith.constant 0 : i32
    %c0_i32_1 = arith.constant 0 : i32
    return %c0_i32, %c0_i32_0 : i32, i32
  }
  func.func @transform_4(%arg0: i32) -> (i32, i32) {
    %c0_i32 = arith.constant 0 : i32
    %c0_i32_0 = arith.constant 0 : i32
    %c0_i32_1 = arith.constant 0 : i32
    return %c0_i32, %c0_i32_0 : i32, i32
  }
  func.func @transform_5(%arg0: i32) -> (i32, i32) {
    %c0_i32 = arith.constant 0 : i32
    %c0_i32_0 = arith.constant 0 : i32
    %c0_i32_1 = arith.constant 0 : i32
    return %c0_i32, %c0_i32_0 : i32, i32
  }
  func.func @transform_6(%arg0: i32) -> (i32, i32) {
    %c0_i32 = arith.constant 0 : i32
    %c0_i32_0 = arith.constant 0 : i32
    %c0_i32_1 = arith.constant 0 : i32
    return %c0_i32, %c0_i32_0 : i32, i32
  }
  func.func @transform_7(%arg0: i32) -> (i32, i32) {
    %c0_i32 = arith.constant 0 : i32
    %c0_i32_0 = arith.constant 0 : i32
    return %arg0, %c0_i32 : i32, i32
  }
}

</mosaic_0001>

<bundles_post_ra>
// kernel: convnet_forward.3
= control target key start
LH: loop header
LB: loop body
LE: loop exit
PB: predicated region body
PF: predicated region fallthrough
CT: control target
= control target key end

     0   :  { %s3345_s12 = smov 0   ;;  %s3347_s13 = smov 0   ;;  %s4278_s0 = inlined_call_operand.vmem [shape: bf16[4,392,75], index: 0, kind: input, shape index: {}]   ;;  %s4279_s1 = inlined_call_operand.vmem [shape: bf16[75,6], index: 1, kind: input, shape index: {}]   ;;  %s4280_s2 = inlined_call_operand.vmem [shape: f32[1,6], index: 2, kind: input, shape index: {}]   ;;  %s4281_s3 = inlined_call_operand.vmem [shape: bf16[392,6], index: 3, kind: output, shape index: {}]  }
   0x1   :  { %s3349_s14 = smov 0  }
   0x2 LB: > { %s3361_s15 = sadd.s32 4294967295, %s3256_s14   ;;  %s3364_s16 = sadd.s32 1, %s3256_s14   ;;  %s3256_s14 = sphi %s3349_s14, %s4333_s14   ;;  %s3252_s13 = sphi %s3347_s13, %s4332_s13   ;;  %s3248_s12 = sphi %s3345_s12, %s4331_s12  }
   0x3   : > { %s17_s17 = ssub.s32 %s3256_s14, %s3364_s16  ;;  %s20_s18 = sadd.s32 1, %s3252_s13 }
   0x4   : > { %p18_p0 = scmp.eq.s32.totalorder %s17_s17, 0  ;;  %p27_p1 = scmp.ne.s32.totalorder %s3252_s13, %s3248_s12 }
   0x5   : > { %p28_p2 = scmp.eq.s32.totalorder %s3256_s14, 0  ;;  %p99_p3 = scmp.eq.s32.totalorder %s3361_s15, 1 }
   0x6   : > { %s3374_s19 = scalar_select %p18_p0, %s3252_s13, %s20_s18  }
   0x7   : > { %p29_p4 = por %p28_p2, %p27_p1  ;;  %p3376_p5 = por %p99_p3, %p27_p1 }
   0x8   : > { %p2359_p6 = scmp.ge.s32.totalorder %s3256_s14, 2 }
   0xa   : > { %127 = sbr.rel (%p2359_p6) target bundleno = 119 (0x77), region = 24 }
  0x11   : > { %130 = sbr.rel (!%p29_p4) target bundleno = 119 (0x77), region = 28  ;;  %s132_s21 = sand.u32 (%p29_p4), 1, %s3252_s13  }
  0x12   : > { %s135_s22 = smul.u32 (%p29_p4), 26, %s3256_s14 }
  0x13   : > { %s2950_s23 = smul.u32 (%p29_p4), 416, %s132_s21 }
  0x14   : > { %s136_s24 = ssub.s32 (%p29_p4), 49, %s135_s22  ;;  %s2600_s25 = smul.u32 (%p29_p4), 104, %s3256_s14 }
  0x15   : > { %p137_p7 = scmp.lt.s32.totalorder (%p29_p4), %s136_s24, 26  ;;  %s3392_s30 = scalar_lea.vmem (%p29_p4), [#allocation2], %s2950_s23  }
  0x16   : > { %s3387_s28 = scalar_lea.vmem (%p29_p4), %s4278_s0, %s2600_s25  }
  0x18   : > { %s4335_s24 = smov (!%p137_p7, %s136_s24), 26 }
  0x19   : > { %s2360_s29 = sshll.u32 %s4335_s24, 8 }
  0x1a   : > { %p2363_p8 = scmp.eq.s32.totalorder %s2360_s29, 0 }
  0x1b   : > { %s3395_s4 = sshrl.u32 (!%p2363_p8), %s4335_s24, 4 }
  0x1c   : > { %145 = sbr.rel (%p2363_p8) target bundleno = 119 (0x77), region = 32  ;;  %p2364_p9 = scmp.le.s32.totalorder (!%p2363_p8), %s3395_s4, 0 }
  0x23   : > { %2285 = sbr.rel (%p2364_p9) target bundleno = 94 (0x5e), region = 196  ;;  %s4288_s5 = smov (!%p2364_p9), %s3392_s30 }
  0x24   : > { %s4289_s6 = smov (!%p2364_p9), %s3387_s28  ;;  %s3404_s7 = smov (!%p2364_p9), 0  }
  0x25   : > { %s3406_s8 = smov (!%p2364_p9), 0  }
  0x2a LB: >> { %v161_v0 = vld [vmem:[%s3264_s6] sm:$0xf]  ;;  %v163_v1 = vld [vmem:[%s3264_s6 + $0x4] sm:$0xf]  ;;  %v165_v2 = vld [vmem:[%s3264_s6 + $0x8] sm:$0xf]  ;;  %s3272_s8 = sphi %s3406_s8, %s155_s8   ;;  %s3268_s7 = sphi %s3404_s7, %s4290_s7   ;;  %s3264_s6 = sphi %s4289_s6, %s294_s6   ;;  %s3260_s5 = sphi %s4288_s5, %s295_s5  }
  0x2b   : >> { %162 = vst [vmem:[%s3260_s5] sm:$0xf] %v161_v0  ;;  %164 = vst [vmem:[%s3260_s5 + $0x4] sm:$0xf] %v163_v1  ;;  %v167_v3 = vld [vmem:[%s3264_s6 + $0xc] sm:$0xf]  ;;  %s289_s9 = sadd.s32 1, %s3268_s7 }
  0x2c   : >> { %166 = vst [vmem:[%s3260_s5 + $0x8] sm:$0xf] %v165_v2  ;;  %v169_v4 = vld [vmem:[%s3264_s6 + $0x10] sm:$0xf]  ;;  %v171_v5 = vld [vmem:[%s3264_s6 + $0x14] sm:$0xf]  ;;  %p290_p10 = scmp.ge.s32.totalorder %s289_s9, %s3395_s4 }
  0x2d   : >> { %168 = vst [vmem:[%s3260_s5 + $0xc] sm:$0xf] %v167_v3  ;;  %170 = vst [vmem:[%s3260_s5 + $0x10] sm:$0xf] %v169_v4  ;;  %v173_v6 = vld [vmem:[%s3264_s6 + $0x18] sm:$0xf] }
  0x2e   : >> { %172 = vst [vmem:[%s3260_s5 + $0x14] sm:$0xf] %v171_v5  ;;  %v175_v7 = vld [vmem:[%s3264_s6 + $0x1c] sm:$0xf]  ;;  %v177_v8 = vld [vmem:[%s3264_s6 + $0x20] sm:$0xf] }
  0x2f   : >> { %174 = vst [vmem:[%s3260_s5 + $0x18] sm:$0xf] %v173_v6  ;;  %176 = vst [vmem:[%s3260_s5 + $0x1c] sm:$0xf] %v175_v7  ;;  %v179_v9 = vld [vmem:[%s3264_s6 + $0x24] sm:$0xf] }
  0x30   : >> { %178 = vst [vmem:[%s3260_s5 + $0x20] sm:$0xf] %v177_v8  ;;  %v181_v10 = vld [vmem:[%s3264_s6 + $0x28] sm:$0xf]  ;;  %v183_v11 = vld [vmem:[%s3264_s6 + $0x2c] sm:$0xf] }
  0x31   : >> { %180 = vst [vmem:[%s3260_s5 + $0x24] sm:$0xf] %v179_v9  ;;  %182 = vst [vmem:[%s3260_s5 + $0x28] sm:$0xf] %v181_v10  ;;  %v185_v12 = vld [vmem:[%s3264_s6 + $0x30] sm:$0xf] }
  0x32   : >> { %184 = vst [vmem:[%s3260_s5 + $0x2c] sm:$0xf] %v183_v11  ;;  %v187_v13 = vld [vmem:[%s3264_s6 + $0x34] sm:$0xf]  ;;  %v189_v14 = vld [vmem:[%s3264_s6 + $0x38] sm:$0xf] }
  0x33   : >> { %186 = vst [vmem:[%s3260_s5 + $0x30] sm:$0xf] %v185_v12  ;;  %188 = vst [vmem:[%s3260_s5 + $0x34] sm:$0xf] %v187_v13  ;;  %v191_v15 = vld [vmem:[%s3264_s6 + $0x3c] sm:$0xf] }
  0x34   : >> { %190 = vst [vmem:[%s3260_s5 + $0x38] sm:$0xf] %v189_v14  ;;  %v193_v16 = vld [vmem:[%s3264_s6 + $0xc4] sm:$0xf]  ;;  %v195_v17 = vld [vmem:[%s3264_s6 + $0xc8] sm:$0xf] }
  0x35   : >> { %192 = vst [vmem:[%s3260_s5 + $0x3c] sm:$0xf] %v191_v15  ;;  %194 = vst [vmem:[%s3260_s5 + $0x68] sm:$0xf] %v193_v16  ;;  %v197_v18 = vld [vmem:[%s3264_s6 + $0xcc] sm:$0xf] }
  0x36   : >> { %196 = vst [vmem:[%s3260_s5 + $0x6c] sm:$0xf] %v195_v17  ;;  %v199_v19 = vld [vmem:[%s3264_s6 + $0xd0] sm:$0xf]  ;;  %v201_v20 = vld [vmem:[%s3264_s6 + $0xd4] sm:$0xf] }
  0x37   : >> { %198 = vst [vmem:[%s3260_s5 + $0x70] sm:$0xf] %v197_v18  ;;  %200 = vst [vmem:[%s3260_s5 + $0x74] sm:$0xf] %v199_v19  ;;  %v203_v21 = vld [vmem:[%s3264_s6 + $0xd8] sm:$0xf] }
  0x38   : >> { %202 = vst [vmem:[%s3260_s5 + $0x78] sm:$0xf] %v201_v20  ;;  %v205_v22 = vld [vmem:[%s3264_s6 + $0xdc] sm:$0xf]  ;;  %v207_v23 = vld [vmem:[%s3264_s6 + $0xe0] sm:$0xf] }
  0x39   : >> { %204 = vst [vmem:[%s3260_s5 + $0x7c] sm:$0xf] %v203_v21  ;;  %206 = vst [vmem:[%s3260_s5 + $0x80] sm:$0xf] %v205_v22  ;;  %v209_v24 = vld [vmem:[%s3264_s6 + $0xe4] sm:$0xf] }
  0x3a   : >> { %208 = vst [vmem:[%s3260_s5 + $0x84] sm:$0xf] %v207_v23  ;;  %v211_v25 = vld [vmem:[%s3264_s6 + $0xe8] sm:$0xf]  ;;  %v213_v26 = vld [vmem:[%s3264_s6 + $0xec] sm:$0xf] }
  0x3b   : >> { %210 = vst [vmem:[%s3260_s5 + $0x88] sm:$0xf] %v209_v24  ;;  %212 = vst [vmem:[%s3260_s5 + $0x8c] sm:$0xf] %v211_v25  ;;  %v215_v27 = vld [vmem:[%s3264_s6 + $0xf0] sm:$0xf] }
  0x3c   : >> { %214 = vst [vmem:[%s3260_s5 + $0x90] sm:$0xf] %v213_v26  ;;  %v217_v28 = vld [vmem:[%s3264_s6 + $0xf4] sm:$0xf]  ;;  %v219_v29 = vld [vmem:[%s3264_s6 + $0xf8] sm:$0xf] }
  0x3d   : >> { %216 = vst [vmem:[%s3260_s5 + $0x94] sm:$0xf] %v215_v27  ;;  %218 = vst [vmem:[%s3260_s5 + $0x98] sm:$0xf] %v217_v28  ;;  %v221_v30 = vld [vmem:[%s3264_s6 + $0xfc] sm:$0xf] }
  0x3e   : >> { %220 = vst [vmem:[%s3260_s5 + $0x9c] sm:$0xf] %v219_v29  ;;  %v223_v31 = vld [vmem:[%s3264_s6 + $0x100] sm:$0xf]  ;;  %v225_v32 = vld [vmem:[%s3264_s6 + $0x188] sm:$0xf] }
  0x3f   : >> { %222 = vst [vmem:[%s3260_s5 + $0xa0] sm:$0xf] %v221_v30  ;;  %224 = vst [vmem:[%s3260_s5 + $0xa4] sm:$0xf] %v223_v31  ;;  %v227_v33 = vld [vmem:[%s3264_s6 + $0x18c] sm:$0xf] }
  0x40   : >> { %226 = vst [vmem:[%s3260_s5 + $0xd0] sm:$0xf] %v225_v32  ;;  %v229_v34 = vld [vmem:[%s3264_s6 + $0x190] sm:$0xf]  ;;  %v231_v35 = vld [vmem:[%s3264_s6 + $0x194] sm:$0xf] }
  0x41   : >> { %228 = vst [vmem:[%s3260_s5 + $0xd4] sm:$0xf] %v227_v33  ;;  %230 = vst [vmem:[%s3260_s5 + $0xd8] sm:$0xf] %v229_v34  ;;  %v233_v36 = vld [vmem:[%s3264_s6 + $0x198] sm:$0xf] }
  0x42   : >> { %232 = vst [vmem:[%s3260_s5 + $0xdc] sm:$0xf] %v231_v35  ;;  %v235_v37 = vld [vmem:[%s3264_s6 + $0x19c] sm:$0xf]  ;;  %v237_v38 = vld [vmem:[%s3264_s6 + $0x1a0] sm:$0xf] }
  0x43   : >> { %234 = vst [vmem:[%s3260_s5 + $0xe0] sm:$0xf] %v233_v36  ;;  %236 = vst [vmem:[%s3260_s5 + $0xe4] sm:$0xf] %v235_v37  ;;  %v239_v39 = vld [vmem:[%s3264_s6 + $0x1a4] sm:$0xf] }
  0x44   : >> { %238 = vst [vmem:[%s3260_s5 + $0xe8] sm:$0xf] %v237_v38  ;;  %v241_v40 = vld [vmem:[%s3264_s6 + $0x1a8] sm:$0xf]  ;;  %v243_v41 = vld [vmem:[%s3264_s6 + $0x1ac] sm:$0xf] }
  0x45   : >> { %240 = vst [vmem:[%s3260_s5 + $0xec] sm:$0xf] %v239_v39  ;;  %242 = vst [vmem:[%s3260_s5 + $0xf0] sm:$0xf] %v241_v40  ;;  %v245_v42 = vld [vmem:[%s3264_s6 + $0x1b0] sm:$0xf] }
  0x46   : >> { %244 = vst [vmem:[%s3260_s5 + $0xf4] sm:$0xf] %v243_v41  ;;  %v247_v43 = vld [vmem:[%s3264_s6 + $0x1b4] sm:$0xf]  ;;  %v249_v44 = vld [vmem:[%s3264_s6 + $0x1b8] sm:$0xf] }
  0x47   : >> { %246 = vst [vmem:[%s3260_s5 + $0xf8] sm:$0xf] %v245_v42  ;;  %248 = vst [vmem:[%s3260_s5 + $0xfc] sm:$0xf] %v247_v43  ;;  %v251_v45 = vld [vmem:[%s3264_s6 + $0x1bc] sm:$0xf] }
  0x48   : >> { %250 = vst [vmem:[%s3260_s5 + $0x100] sm:$0xf] %v249_v44  ;;  %v253_v46 = vld [vmem:[%s3264_s6 + $0x1c0] sm:$0xf]  ;;  %v255_v47 = vld [vmem:[%s3264_s6 + $0x1c4] sm:$0xf] }
  0x49   : >> { %252 = vst [vmem:[%s3260_s5 + $0x104] sm:$0xf] %v251_v45  ;;  %254 = vst [vmem:[%s3260_s5 + $0x108] sm:$0xf] %v253_v46  ;;  %v257_v48 = vld [vmem:[%s3264_s6 + $0x24c] sm:$0xf] }
  0x4a   : >> { %256 = vst [vmem:[%s3260_s5 + $0x10c] sm:$0xf] %v255_v47  ;;  %v259_v49 = vld [vmem:[%s3264_s6 + $0x250] sm:$0xf]  ;;  %v261_v50 = vld [vmem:[%s3264_s6 + $0x254] sm:$0xf] }
  0x4b   : >> { %258 = vst [vmem:[%s3260_s5 + $0x138] sm:$0xf] %v257_v48  ;;  %260 = vst [vmem:[%s3260_s5 + $0x13c] sm:$0xf] %v259_v49  ;;  %v263_v51 = vld [vmem:[%s3264_s6 + $0x258] sm:$0xf] }
  0x4c   : >> { %262 = vst [vmem:[%s3260_s5 + $0x140] sm:$0xf] %v261_v50  ;;  %v265_v52 = vld [vmem:[%s3264_s6 + $0x25c] sm:$0xf]  ;;  %v267_v53 = vld [vmem:[%s3264_s6 + $0x260] sm:$0xf] }
  0x4d   : >> { %264 = vst [vmem:[%s3260_s5 + $0x144] sm:$0xf] %v263_v51  ;;  %266 = vst [vmem:[%s3260_s5 + $0x148] sm:$0xf] %v265_v52  ;;  %v269_v54 = vld [vmem:[%s3264_s6 + $0x264] sm:$0xf] }
  0x4e   : >> { %268 = vst [vmem:[%s3260_s5 + $0x14c] sm:$0xf] %v267_v53  ;;  %v271_v55 = vld [vmem:[%s3264_s6 + $0x268] sm:$0xf]  ;;  %v273_v56 = vld [vmem:[%s3264_s6 + $0x26c] sm:$0xf] }
  0x4f   : >> { %270 = vst [vmem:[%s3260_s5 + $0x150] sm:$0xf] %v269_v54  ;;  %272 = vst [vmem:[%s3260_s5 + $0x154] sm:$0xf] %v271_v55  ;;  %v275_v57 = vld [vmem:[%s3264_s6 + $0x270] sm:$0xf] }
  0x50   : >> { %274 = vst [vmem:[%s3260_s5 + $0x158] sm:$0xf] %v273_v56  ;;  %v277_v58 = vld [vmem:[%s3264_s6 + $0x274] sm:$0xf]  ;;  %v279_v59 = vld [vmem:[%s3264_s6 + $0x278] sm:$0xf] }
  0x51   : >> { %276 = vst [vmem:[%s3260_s5 + $0x15c] sm:$0xf] %v275_v57  ;;  %278 = vst [vmem:[%s3260_s5 + $0x160] sm:$0xf] %v277_v58  ;;  %v281_v60 = vld [vmem:[%s3264_s6 + $0x27c] sm:$0xf] }
  0x52   : >> { %280 = vst [vmem:[%s3260_s5 + $0x164] sm:$0xf] %v279_v59  ;;  %v283_v61 = vld [vmem:[%s3264_s6 + $0x280] sm:$0xf]  ;;  %v285_v62 = vld [vmem:[%s3264_s6 + $0x284] sm:$0xf] }
  0x53   : >> { %282 = vst [vmem:[%s3260_s5 + $0x168] sm:$0xf] %v281_v60  ;;  %284 = vst [vmem:[%s3260_s5 + $0x16c] sm:$0xf] %v283_v61  ;;  %v287_v63 = vld [vmem:[%s3264_s6 + $0x288] sm:$0xf] }
  0x54   : >> { %286 = vst [vmem:[%s3260_s5 + $0x170] sm:$0xf] %v285_v62  ;;  %288 = vst [vmem:[%s3260_s5 + $0x174] sm:$0xf] %v287_v63  ;;  %s4337_s9 = smov (%p290_p10, %s289_s9), 0  ;;  %s155_s8 = sadd.s32 1, %s3272_s8  }
  0x55   : >> { %s2365_s10 = sshll.u32 %s4337_s9, 6  ;;  %p154_p11 = scmp.ge.s32.totalorder %s155_s8, %s3395_s4 }
  0x56   : >> { %s294_s6 = scalar_lea.vmem %s3387_s28, %s2365_s10   ;;  %s295_s5 = scalar_lea.vmem %s3392_s30, %s2365_s10 [#allocation2]  }
  0x57   : >> { %s4290_s7 = smov %s4337_s9  ;;  %157 = sbr.rel (!%p154_p11) target bundleno = 42 (0x2a), region = 202 }
  0x5e PF: > { %s3563_s11 = sand.u32 15, %s4335_s24   ;;  %s2601_s17 = sshll.u32 %s3395_s4, 6 }
  0x5f   : > { %s3567_s18 = scalar_lea.vmem %s3387_s28, %s2601_s17   ;;  %s3570_s21 = scalar_lea.vmem %s3392_s30, %s2601_s17 [#allocation2]  }
  0x60   : > { %p2370_p12 = scmp.le.s32.totalorder %s3563_s11, 0 }
  0x61   : > { %s4291_s22 = smov (!%p2370_p12), %s3570_s21  ;;  %s4292_s23 = smov (!%p2370_p12), %s3567_s18 }
  0x62   : > { %2299 = sbr.rel (%p2370_p12) target bundleno = 119 (0x77), region = 207  ;;  %s3282_s25 = smov (!%p2370_p12), 0  }
  0x63   : > { %s3286_s26 = smov (!%p2370_p12), 0  }
  0x69 LB: >> { %v312_v0 = vld [vmem:[%s3280_s23] sm:$0xf]  ;;  %v314_v1 = vld [vmem:[%s3280_s23 + $0xc4] sm:$0xf]  ;;  %v316_v2 = vld [vmem:[%s3280_s23 + $0x188] sm:$0xf]  ;;  %s3288_s26 = sphi %s3286_s26, %s306_s26   ;;  %s3284_s25 = sphi %s3282_s25, %s3283_s25   ;;  %s3280_s23 = sphi %s4292_s23, %s325_s23   ;;  %s3276_s22 = sphi %s4291_s22, %s326_s22  }
  0x6a   : >> { %313 = vst [vmem:[%s3276_s22] sm:$0xf] %v312_v0  ;;  %315 = vst [vmem:[%s3276_s22 + $0x68] sm:$0xf] %v314_v1  ;;  %v318_v3 = vld [vmem:[%s3280_s23 + $0x24c] sm:$0xf]  ;;  %s320_s24 = sadd.s32 1, %s3284_s25 }
  0x6b   : >> { %317 = vst [vmem:[%s3276_s22 + $0xd0] sm:$0xf] %v316_v2  ;;  %319 = vst [vmem:[%s3276_s22 + $0x138] sm:$0xf] %v318_v3  ;;  %p321_p13 = scmp.ge.s32.totalorder %s320_s24, %s3563_s11  ;;  %s306_s26 = sadd.s32 1, %s3288_s26  }
  0x6c   : >> { %p305_p0 = scmp.ge.s32.totalorder %s306_s26, %s3563_s11 }
  0x6d   : >> { %s4339_s24 = smov (%p321_p13, %s320_s24), 0 }
  0x6e   : >> { %s2371_s27 = sshll.u32 %s4339_s24, 2  ;;  %s3283_s25 = smov %s4339_s24  }
  0x6f   : >> { %s325_s23 = scalar_lea.vmem %s3567_s18, %s2371_s27   ;;  %s326_s22 = scalar_lea.vmem %s3570_s21, %s2371_s27 [#allocation2]  }
  0x70   : > { %308 = sbr.rel (!%p305_p0) target bundleno = 105 (0x69), region = 213 }
  0x77 PF: > { %p2373_p1 = scmp.ge.s32.totalorder %s3256_s14, 1  ;;  %p549_p2 = scmp.lt.s32.totalorder %s3256_s14, 3 }
  0x79   : > { %p550_p3 = pnand %p2373_p1, %p549_p2 }
  0x7b   : > { %553 = sbr.rel (%p550_p3) target bundleno = 655 (0x28f), region = 90 }
  0x82   : > { %v3109_v4 = vld [vmem:[%s4279_s1] sm:$0xff]   ;;  %v3322_v5 = vmov 0.0   ;;  %v3110_v6 = vld [vmem:[%s4279_s1 + $0x8] sm:$0xff]   ;;  %vm759_vm0 = vcmask 1044480   ;;  %s556_s14 = sand.u32 1, %s3248_s12   ;;  %v3111_v7 = vld [vmem:[%s4279_s1 + $0x10] sm:$0xff]  }
  0x83   : > { %2702 = vmatprep.subr.bf16.mxu0 %v3322_v5  ;;  %2764 = vmatprep.subr.bf16.mxu1 %v3322_v5  ;;  %s2951_s7 = smul.u32 416, %s556_s14  ;;  %vm760_vm1 = vcmask 1045504   ;;  %v3323_v8 = vmov 65535   ;;  %vm3324_vm2 = vmmov 0   ;;  %v3112_v10 = vld [vmem:[%s4279_s1 + $0x18] sm:$0xff]   ;;  %vm719_vm3 = vcmask 613376  }
  0x84   : > { %2703 = vmatpush3.bf16.msra.mxu0 %v3109_v4  ;;  %2765 = vmatpush3.bf16.msra.mxu1 %v3109_v4  ;;  %v761_v9 = vsel %vm759_vm0, 4294967295, %v3323_v8  ;;  %v3113_v11 = vld [vmem:[%s4279_s1 + $0x20] sm:$0x3f]   ;;  %s2952_s22 = smul.u32 104, %s556_s14  ;;  %vm1948_vm4 = vcmask 44032  }
  0x85   : > { %2704 = vmatprep.subr.bf16.mxu0 %v3322_v5  ;;  %2766 = vmatprep.subr.bf16.mxu1 %v3322_v5  ;;  %s3616_s10 = scalar_lea.vmem [#allocation2], %s2951_s7  ;;  %v762_v12 = vsel %vm760_vm1, %v761_v9, 0  ;;  %s1982_s23 = smul.u32 (%p3376_p5), 26, %s3361_s15 }
  0x86   : > { %2712 = vmatprep.mubr.msk.bf16.mxu0 %vm3324_vm2, %v3322_v5  ;;  %2774 = vmatprep.mubr.msk.bf16.mxu1 %vm3324_vm2, %v3322_v5  ;;  %v764_v13 = vand.u32 %v3113_v11, %v762_v12  ;;  %v3114_v14 = vld [vmem:[%s3616_s10] sm:$0xff]   ;;  %v3115_v15 = vld [vmem:[%s3616_s10 + $0x68] sm:$0xff]   ;;  %v3117_v17 = vld [vmem:[%s3616_s10 + $0x70] sm:$0xff]   ;;  %s4010_s12 = scalar_lea.vmem [#allocation3], %s2952_s22   ;;  %s2629_s25 = smul.u32 (%p3376_p5), 104, %s3361_s15 }
  0x87   : > { %v3116_v16 = vld [vmem:[%s3616_s10 + $0x8] sm:$0xff]   ;;  %v3118_v18 = vld [vmem:[%s3616_s10 + $0x10] sm:$0xff]   ;;  %v3119_v19 = vld [vmem:[%s3616_s10 + $0x78] sm:$0xff]   ;;  %s1983_s26 = ssub.s32 (%p3376_p5), 49, %s1982_s23 }
  0x88   : > { %2705 = vmatpush3.bf16.msra.mxu0 %v3110_v6  ;;  %2767 = vmatpush3.bf16.msra.mxu1 %v3110_v6  ;;  %v3120_v20 = vld [vmem:[%s3616_s10 + $0x18] sm:$0xff]   ;;  %v3121_v21 = vld [vmem:[%s3616_s10 + $0x80] sm:$0xff]   ;;  %v3123_v23 = vld [vmem:[%s3616_s10 + $0x88] sm:$0xff]   ;;  %p1984_p4 = scmp.lt.s32.totalorder (%p3376_p5), %s1983_s26, 26  ;;  %s4167_s28 = scalar_lea.vmem (%p3376_p5), %s4281_s3, %s2629_s25  }
  0x89   : > { %2706 = vmatprep.subr.bf16.mxu0 %v3322_v5  ;;  %2768 = vmatprep.subr.bf16.mxu1 %v3322_v5  ;;  %v3122_v22 = vld [vmem:[%s3616_s10 + $0x20] sm:$0xff]   ;;  %v3124_v24 = vld [vmem:[%s3616_s10 + $0x28] sm:$0xff]   ;;  %v3125_v25 = vld [vmem:[%s3616_s10 + $0x90] sm:$0xff]  }
  0x8a   : > { %v3126_v26 = vld [vmem:[%s3616_s10 + $0x30] sm:$0xff]   ;;  %v3127_v27 = vld [vmem:[%s3616_s10 + $0x98] sm:$0xff]   ;;  %v3129_v29 = vld [vmem:[%s3616_s10 + $0xa0] sm:$0xff]  }
  0x8b   : > { %v3128_v28 = vld [vmem:[%s3616_s10 + $0x38] sm:$0xff]   ;;  %v3130_v30 = vld [vmem:[%s3616_s10 + $0x40] sm:$0xff]   ;;  %v3131_v31 = vld [vmem:[%s3616_s10 + $0xa8] sm:$0xff]  }
  0x8c   : > { %2707 = vmatpush3.bf16.msra.mxu0 %v3111_v7  ;;  %2769 = vmatpush3.bf16.msra.mxu1 %v3111_v7  ;;  %v3132_v32 = vld [vmem:[%s3616_s10 + $0x48] sm:$0xff]   ;;  %v3133_v33 = vld [vmem:[%s3616_s10 + $0xb0] sm:$0xff]   ;;  %v3135_v35 = vld [vmem:[%s3616_s10 + $0xb8] sm:$0xff]  }
  0x8d   : > { %2708 = vmatprep.subr.bf16.mxu0 %v3322_v5  ;;  %2770 = vmatprep.subr.bf16.mxu1 %v3322_v5  ;;  %v3134_v34 = vld [vmem:[%s3616_s10 + $0x50] sm:$0xff]   ;;  %v3136_v36 = vld [vmem:[%s3616_s10 + $0x58] sm:$0xff]   ;;  %v3137_v37 = vld [vmem:[%s3616_s10 + $0xc0] sm:$0xff]  }
  0x8e   : > { %v3138_v38 = vld [vmem:[%s3616_s10 + $0x60] sm:$0xff]   ;;  %v3139_v39 = vld [vmem:[%s3616_s10 + $0xc8] sm:$0xff]   ;;  %v3140_v40 = vld [vmem:[%s3616_s10 + $0xd0] sm:$0xff]  }
  0x8f   : > { %v3141_v41 = vld [vmem:[%s3616_s10 + $0x138] sm:$0xff]   ;;  %v3143_v43 = vld [vmem:[%s3616_s10 + $0x140] sm:$0xff]   ;;  %v3145_v45 = vld [vmem:[%s3616_s10 + $0x148] sm:$0xff]  }
  0x90   : > { %2709 = vmatpush3.bf16.msra.mxu0 %v3112_v10  ;;  %2771 = vmatpush3.bf16.msra.mxu1 %v3112_v10  ;;  %v3142_v42 = vld [vmem:[%s3616_s10 + $0xd8] sm:$0xff]   ;;  %v3144_v44 = vld [vmem:[%s3616_s10 + $0xe0] sm:$0xff]   ;;  %v3146_v46 = vld [vmem:[%s3616_s10 + $0xe8] sm:$0xff]  }
  0x91   : > { %2710 = vmatprep.subr.bf16.mxu0 %v3322_v5  ;;  %2772 = vmatprep.subr.bf16.mxu1 %v3322_v5  ;;  %v3147_v47 = vld [vmem:[%s3616_s10 + $0x150] sm:$0xff]   ;;  %v3149_v49 = vld [vmem:[%s3616_s10 + $0x158] sm:$0xff]   ;;  %v3151_v51 = vld [vmem:[%s3616_s10 + $0x160] sm:$0xff]  }
  0x92   : > { %v3148_v48 = vld [vmem:[%s3616_s10 + $0xf0] sm:$0xff]   ;;  %v3150_v50 = vld [vmem:[%s3616_s10 + $0xf8] sm:$0xff]   ;;  %v3152_v52 = vld [vmem:[%s3616_s10 + $0x100] sm:$0xff]  }
  0x93   : > { %v3153_v53 = vld [vmem:[%s3616_s10 + $0x168] sm:$0xff]   ;;  %v3155_v55 = vld [vmem:[%s3616_s10 + $0x170] sm:$0xff]   ;;  %v3157_v57 = vld [vmem:[%s3616_s10 + $0x178] sm:$0xff]  }
  0x94   : > { %2711 = vmatpush3.bf16.msra.mxu0 %v764_v13  ;;  %2773 = vmatpush3.bf16.msra.mxu1 %v764_v13  ;;  %v3154_v54 = vld [vmem:[%s3616_s10 + $0x108] sm:$0xff]   ;;  %v3156_v56 = vld [vmem:[%s3616_s10 + $0x110] sm:$0xff]   ;;  %v3158_v58 = vld [vmem:[%s3616_s10 + $0x118] sm:$0xff]  }
  0x95   : > { %2826 = vmatprep.subr.bf16.mxu0 %v3322_v5  ;;  %2888 = vmatprep.subr.bf16.mxu1 %v3322_v5  ;;  %v3159_v59 = vld [vmem:[%s3616_s10 + $0x180] sm:$0xff]   ;;  %v3161_v61 = vld [vmem:[%s3616_s10 + $0x188] sm:$0xff]   ;;  %v3163_v63 = vld [vmem:[%s3616_s10 + $0x190] sm:$0xff]  }
  0x96   : > { %v3160_v60 = vld [vmem:[%s3616_s10 + $0x120] sm:$0xff]   ;;  %v3162_v62 = vld [vmem:[%s3616_s10 + $0x128] sm:$0xff]   ;;  %v3164_v0 = vld [vmem:[%s3616_s10 + $0x130] sm:$0xff]  }
  0x97   : > { %2713 = vmatmul.mubr.msk.bf16.vlgmr.msra.gmra.mrb[0].mxu0 %vm719_vm3, %v3114_v14  ;;  %2775 = vmatmul.mubr.msk.bf16.vlgmr.msra.gmra.mrb[0].mxu1 %vm719_vm3, %v3115_v15  ;;  %v3165_v1 = vld [vmem:[%s3616_s10 + $0x198] sm:$0xff]  }
  0x98   : > { %2827 = vmatpush3.bf16.msra.mxu0 %v3109_v4  ;;  %2889 = vmatpush3.bf16.msra.mxu1 %v3109_v4 }
  0x99   : > { %2716 = vmatprep.mubr.msk.bf16.mxu0 %vm3324_vm2, %v3322_v5  ;;  %2778 = vmatprep.mubr.msk.bf16.mxu1 %vm3324_vm2, %v3322_v5 }
  0x9a   : > { %2828 = vmatprep.subr.bf16.mxu0 %v3322_v5  ;;  %2890 = vmatprep.subr.bf16.mxu1 %v3322_v5 }
  0x9c   : > { %2829 = vmatpush3.bf16.msra.mxu0 %v3110_v6  ;;  %2891 = vmatpush3.bf16.msra.mxu1 %v3110_v6 }
  0x9d   : > { %2830 = vmatprep.subr.bf16.mxu0 %v3322_v5  ;;  %2892 = vmatprep.subr.bf16.mxu1 %v3322_v5 }
  0x9f   : > { %2717 = vmatmul.mubr.msk.bf16.gmra.mrb[4].mxu0 %vm719_vm3, %v3116_v16  ;;  %2779 = vmatmul.mubr.msk.bf16.gmra.mrb[4].mxu1 %vm719_vm3, %v3117_v17 }
  0xa0   : > { %2720 = vmatprep.mubr.msk.bf16.mxu0 %vm3324_vm2, %v3322_v5  ;;  %2782 = vmatprep.mubr.msk.bf16.mxu1 %vm3324_vm2, %v3322_v5 }
  0xa1   : > { %2831 = vmatpush3.bf16.msra.mxu0 %v3111_v7  ;;  %2893 = vmatpush3.bf16.msra.mxu1 %v3111_v7 }
  0xa2   : > { %2832 = vmatprep.subr.bf16.mxu0 %v3322_v5  ;;  %2894 = vmatprep.subr.bf16.mxu1 %v3322_v5 }
  0xa5   : > { %2833 = vmatpush3.bf16.msra.mxu0 %v3112_v10  ;;  %2895 = vmatpush3.bf16.msra.mxu1 %v3112_v10 }
  0xa6   : > { %2834 = vmatprep.subr.bf16.mxu0 %v3322_v5  ;;  %2896 = vmatprep.subr.bf16.mxu1 %v3322_v5 }
  0xa7   : > { %2721 = vmatmul.mubr.msk.bf16.gmra.mrb[8].mxu0 %vm719_vm3, %v3118_v18  ;;  %2783 = vmatmul.mubr.msk.bf16.gmra.mrb[8].mxu1 %vm719_vm3, %v3119_v19 }
  0xa8   : > { %2724 = vmatprep.mubr.msk.bf16.mxu0 %vm3324_vm2, %v3322_v5  ;;  %2786 = vmatprep.mubr.msk.bf16.mxu1 %vm3324_vm2, %v3322_v5 }
  0xa9   : > { %2835 = vmatpush3.bf16.msra.mxu0 %v764_v13  ;;  %2897 = vmatpush3.bf16.msra.mxu1 %v764_v13 }
  0xaf   : > { %2725 = vmatmul.mubr.msk.bf16.gmra.mrb[12].mxu0 %vm719_vm3, %v3120_v20  ;;  %2787 = vmatmul.mubr.msk.bf16.gmra.mrb[12].mxu1 %vm719_vm3, %v3121_v21 }
  0xb0   : > { %2728 = vmatprep.mubr.msk.bf16.mxu0 %vm3324_vm2, %v3322_v5  ;;  %2790 = vmatprep.mubr.msk.bf16.mxu1 %vm3324_vm2, %v3322_v5 }
  0xb7   : > { %2729 = vmatmul.mubr.msk.bf16.gmra.mrb[16].mxu0 %vm719_vm3, %v3122_v22  ;;  %2791 = vmatmul.mubr.msk.bf16.gmra.mrb[16].mxu1 %vm719_vm3, %v3123_v23 }
  0xb8   : > { %2732 = vmatprep.mubr.msk.bf16.mxu0 %vm3324_vm2, %v3322_v5  ;;  %2794 = vmatprep.mubr.msk.bf16.mxu1 %vm3324_vm2, %v3322_v5 }
  0xbf   : > { %2733 = vmatmul.mubr.msk.bf16.gmra.mrb[20].mxu0 %vm719_vm3, %v3124_v24  ;;  %2795 = vmatmul.mubr.msk.bf16.gmra.mrb[20].mxu1 %vm719_vm3, %v3125_v25 }
  0xc0   : > { %2736 = vmatprep.mubr.msk.bf16.mxu0 %vm3324_vm2, %v3322_v5  ;;  %2798 = vmatprep.mubr.msk.bf16.mxu1 %vm3324_vm2, %v3322_v5 }
  0xc7   : > { %2737 = vmatmul.mubr.msk.bf16.gmra.mrb[24].mxu0 %vm719_vm3, %v3126_v26  ;;  %2799 = vmatmul.mubr.msk.bf16.gmra.mrb[24].mxu1 %vm719_vm3, %v3127_v27 }
  0xc8   : > { %2740 = vmatprep.mubr.msk.bf16.mxu0 %vm3324_vm2, %v3322_v5  ;;  %2802 = vmatprep.mubr.msk.bf16.mxu1 %vm3324_vm2, %v3322_v5 }
  0xcf   : > { %2741 = vmatmul.mubr.msk.bf16.gmra.mrb[28].mxu0 %vm719_vm3, %v3128_v28  ;;  %2803 = vmatmul.mubr.msk.bf16.gmra.mrb[28].mxu1 %vm719_vm3, %v3129_v29 }
  0xd0   : > { %2744 = vmatprep.mubr.msk.bf16.mxu0 %vm3324_vm2, %v3322_v5  ;;  %2806 = vmatprep.mubr.msk.bf16.mxu1 %vm3324_vm2, %v3322_v5 }
  0xd7   : > { %2745 = vmatmul.mubr.msk.bf16.gmra.mrb[32].mxu0 %vm719_vm3, %v3130_v30  ;;  %2807 = vmatmul.mubr.msk.bf16.gmra.mrb[32].mxu1 %vm719_vm3, %v3131_v31 }
  0xd8   : > { %2748 = vmatprep.mubr.msk.bf16.mxu0 %vm3324_vm2, %v3322_v5  ;;  %2810 = vmatprep.mubr.msk.bf16.mxu1 %vm3324_vm2, %v3322_v5 }
  0xdf   : > { %2749 = vmatmul.mubr.msk.bf16.gmra.mrb[36].mxu0 %vm719_vm3, %v3132_v32  ;;  %2811 = vmatmul.mubr.msk.bf16.gmra.mrb[36].mxu1 %vm719_vm3, %v3133_v33 }
  0xe0   : > { %2752 = vmatprep.mubr.msk.bf16.mxu0 %vm3324_vm2, %v3322_v5  ;;  %2814 = vmatprep.mubr.msk.bf16.mxu1 %vm3324_vm2, %v3322_v5 }
  0xe7   : > { %2753 = vmatmul.mubr.msk.bf16.gmra.mrb[40].mxu0 %vm719_vm3, %v3134_v34  ;;  %2815 = vmatmul.mubr.msk.bf16.gmra.mrb[40].mxu1 %vm719_vm3, %v3135_v35 }
  0xe8   : > { %2756 = vmatprep.mubr.msk.bf16.mxu0 %vm3324_vm2, %v3322_v5  ;;  %2818 = vmatprep.mubr.msk.bf16.mxu1 %vm3324_vm2, %v3322_v5 }
  0xef   : > { %2757 = vmatmul.mubr.msk.bf16.gmra.mrb[44].mxu0 %vm719_vm3, %v3136_v36  ;;  %2819 = vmatmul.mubr.msk.bf16.gmra.mrb[44].mxu1 %vm719_vm3, %v3137_v37 }
  0xf0   : > { %2760 = vmatprep.mubr.msk.bf16.mxu0 %vm3324_vm2, %v3322_v5  ;;  %2822 = vmatprep.mubr.msk.bf16.mxu1 %vm3324_vm2, %v3322_v5 }
  0xf7   : > { %2761 = vmatmul.mubr.msk.bf16.gmra.mrb[48].mxu0 %vm719_vm3, %v3138_v38  ;;  %2823 = vmatmul.mubr.msk.bf16.gmra.mrb[48].mxu1 %vm719_vm3, %v3139_v39 }
  0xf8   : > { %2836 = vmatprep.mubr.msk.bf16.mxu0 %vm3324_vm2, %v3322_v5  ;;  %2898 = vmatprep.mubr.msk.bf16.mxu1 %vm3324_vm2, %v3322_v5 }
  0xff   : > { %2837 = vmatmul.mubr.msk.bf16.vlgmr.msra.gmra.mrb[52].mxu0 %vm719_vm3, %v3140_v40  ;;  %2899 = vmatmul.mubr.msk.bf16.vlgmr.msra.gmra.mrb[52].mxu1 %vm719_vm3, %v3141_v41 }
 0x100   : > { %2840 = vmatprep.mubr.msk.bf16.mxu0 %vm3324_vm2, %v3322_v5  ;;  %2902 = vmatprep.mubr.msk.bf16.mxu1 %vm3324_vm2, %v3322_v5 }
 0x107   : > { %2841 = vmatmul.mubr.msk.bf16.gmra.mrb[56].mxu0 %vm719_vm3, %v3142_v42  ;;  %2903 = vmatmul.mubr.msk.bf16.gmra.mrb[56].mxu1 %vm719_vm3, %v3143_v43 }
 0x108   : > { %2844 = vmatprep.mubr.msk.bf16.mxu0 %vm3324_vm2, %v3322_v5  ;;  %2906 = vmatprep.mubr.msk.bf16.mxu1 %vm3324_vm2, %v3322_v5 }
 0x10f   : > { %2845 = vmatmul.mubr.msk.bf16.gmra.mrb[60].mxu0 %vm719_vm3, %v3144_v44  ;;  %2907 = vmatmul.mubr.msk.bf16.gmra.mrb[60].mxu1 %vm719_vm3, %v3145_v45 }
 0x110   : > { %2848 = vmatprep.mubr.msk.bf16.mxu0 %vm3324_vm2, %v3322_v5  ;;  %2910 = vmatprep.mubr.msk.bf16.mxu1 %vm3324_vm2, %v3322_v5 }
 0x117   : > { %2849 = vmatmul.mubr.msk.bf16.gmra.mrb[64].mxu0 %vm719_vm3, %v3146_v46  ;;  %2911 = vmatmul.mubr.msk.bf16.gmra.mrb[64].mxu1 %vm719_vm3, %v3147_v47 }
 0x118   : > { %2852 = vmatprep.mubr.msk.bf16.mxu0 %vm3324_vm2, %v3322_v5  ;;  %2914 = vmatprep.mubr.msk.bf16.mxu1 %vm3324_vm2, %v3322_v5 }
 0x11f   : > { %2853 = vmatmul.mubr.msk.bf16.gmra.mrb[68].mxu0 %vm719_vm3, %v3148_v48  ;;  %2915 = vmatmul.mubr.msk.bf16.gmra.mrb[68].mxu1 %vm719_vm3, %v3149_v49 }
 0x120   : > { %2856 = vmatprep.mubr.msk.bf16.mxu0 %vm3324_vm2, %v3322_v5  ;;  %2918 = vmatprep.mubr.msk.bf16.mxu1 %vm3324_vm2, %v3322_v5 }
 0x127   : > { %2857 = vmatmul.mubr.msk.bf16.gmra.mrb[72].mxu0 %vm719_vm3, %v3150_v50  ;;  %2919 = vmatmul.mubr.msk.bf16.gmra.mrb[72].mxu1 %vm719_vm3, %v3151_v51 }
 0x128   : > { %2860 = vmatprep.mubr.msk.bf16.mxu0 %vm3324_vm2, %v3322_v5  ;;  %2922 = vmatprep.mubr.msk.bf16.mxu1 %vm3324_vm2, %v3322_v5 }
 0x12f   : > { %2861 = vmatmul.mubr.msk.bf16.gmra.mrb[76].mxu0 %vm719_vm3, %v3152_v52  ;;  %2923 = vmatmul.mubr.msk.bf16.gmra.mrb[76].mxu1 %vm719_vm3, %v3153_v53 }
 0x130   : > { %2864 = vmatprep.mubr.msk.bf16.mxu0 %vm3324_vm2, %v3322_v5  ;;  %2926 = vmatprep.mubr.msk.bf16.mxu1 %vm3324_vm2, %v3322_v5 }
 0x137   : > { %2865 = vmatmul.mubr.msk.bf16.gmra.mrb[80].mxu0 %vm719_vm3, %v3154_v54  ;;  %2927 = vmatmul.mubr.msk.bf16.gmra.mrb[80].mxu1 %vm719_vm3, %v3155_v55 }
 0x138   : > { %2868 = vmatprep.mubr.msk.bf16.mxu0 %vm3324_vm2, %v3322_v5  ;;  %2930 = vmatprep.mubr.msk.bf16.mxu1 %vm3324_vm2, %v3322_v5 }
 0x13f   : > { %2869 = vmatmul.mubr.msk.bf16.gmra.mrb[84].mxu0 %vm719_vm3, %v3156_v56  ;;  %2931 = vmatmul.mubr.msk.bf16.gmra.mrb[84].mxu1 %vm719_vm3, %v3157_v57 }
 0x140   : > { %2872 = vmatprep.mubr.msk.bf16.mxu0 %vm3324_vm2, %v3322_v5  ;;  %2934 = vmatprep.mubr.msk.bf16.mxu1 %vm3324_vm2, %v3322_v5 }
 0x147   : > { %2873 = vmatmul.mubr.msk.bf16.gmra.mrb[88].mxu0 %vm719_vm3, %v3158_v58  ;;  %2935 = vmatmul.mubr.msk.bf16.gmra.mrb[88].mxu1 %vm719_vm3, %v3159_v59 }
 0x148   : > { %2876 = vmatprep.mubr.msk.bf16.mxu0 %vm3324_vm2, %v3322_v5  ;;  %2938 = vmatprep.mubr.msk.bf16.mxu1 %vm3324_vm2, %v3322_v5 }
 0x14f   : > { %2877 = vmatmul.mubr.msk.bf16.gmra.mrb[92].mxu0 %vm719_vm3, %v3160_v60  ;;  %2939 = vmatmul.mubr.msk.bf16.gmra.mrb[92].mxu1 %vm719_vm3, %v3161_v61 }
 0x150   : > { %2880 = vmatprep.mubr.msk.bf16.mxu0 %vm3324_vm2, %v3322_v5  ;;  %2942 = vmatprep.mubr.msk.bf16.mxu1 %vm3324_vm2, %v3322_v5 }
 0x157   : > { %2881 = vmatmul.mubr.msk.bf16.gmra.mrb[96].mxu0 %vm719_vm3, %v3162_v62  ;;  %2943 = vmatmul.mubr.msk.bf16.gmra.mrb[96].mxu1 %vm719_vm3, %v3163_v63 }
 0x158   : > { %2884 = vmatprep.mubr.msk.bf16.mxu0 %vm3324_vm2, %v3322_v5  ;;  %2946 = vmatprep.mubr.msk.bf16.mxu1 %vm3324_vm2, %v3322_v5 }
 0x15f   : > { %2885 = vmatmul.mubr.msk.bf16.gmra.mrb[100].mxu0 %vm719_vm3, %v3164_v0  ;;  %2947 = vmatmul.mubr.msk.bf16.gmra.mrb[100].mxu1 %vm719_vm3, %v3165_v1 }
 0x16a   : > { %v3839_v2 = vpop.f32.mrb[0].mxu0  ;;  %v3841_v3 = vpop.f32.mrb[0].mxu1 }
 0x16b   : > { %v1707_v4 = vmax.f32 %v3839_v2, %v3841_v3  ;;  %v2714_v6 = vpop.f32.mrb[1].mxu0  ;;  %v2776_v7 = vpop.f32.mrb[1].mxu1 }
 0x16c   : > { %v3845_v8 = vpop.f32.mrb[2].mxu0  ;;  %v3847_v9 = vpop.f32.mrb[2].mxu1 }
 0x16d   : > { %v2715_v10 = vpop.f32.mrb[3].mxu0  ;;  %v2777_v11 = vpop.f32.mrb[3].mxu1 }
 0x172   : > { %v3851_v12 = vpop.f32.mrb[4].mxu0  ;;  %v3853_v13 = vpop.f32.mrb[4].mxu1 }
 0x173   : > { %v2718_v15 = vpop.f32.mrb[5].mxu0  ;;  %v2780_v16 = vpop.f32.mrb[5].mxu1 }
 0x174   : > { %v3857_v17 = vpop.f32.mrb[6].mxu0  ;;  %v3859_v18 = vpop.f32.mrb[6].mxu1 }
 0x175   : > { %v2719_v20 = vpop.f32.mrb[7].mxu0  ;;  %v2781_v21 = vpop.f32.mrb[7].mxu1 }
 0x17a   : > { %v3863_v22 = vpop.f32.mrb[8].mxu0  ;;  %v3865_v23 = vpop.f32.mrb[8].mxu1 }
 0x17b   : > { %v2722_v25 = vpop.f32.mrb[9].mxu0  ;;  %v2784_v26 = vpop.f32.mrb[9].mxu1 }
 0x17c   : > { %v3869_v27 = vpop.f32.mrb[10].mxu0  ;;  %v3871_v28 = vpop.f32.mrb[10].mxu1 }
 0x17d   : > { %v2723_v30 = vpop.f32.mrb[11].mxu0  ;;  %v2785_v31 = vpop.f32.mrb[11].mxu1 }
 0x182   : > { %v3875_v32 = vpop.f32.mrb[12].mxu0  ;;  %v3877_v33 = vpop.f32.mrb[12].mxu1 }
 0x183   : > { %v2726_v35 = vpop.f32.mrb[13].mxu0  ;;  %v2788_v36 = vpop.f32.mrb[13].mxu1 }
 0x184   : > { %v3881_v37 = vpop.f32.mrb[14].mxu0  ;;  %v3883_v38 = vpop.f32.mrb[14].mxu1 }
 0x185   : > { %v2727_v40 = vpop.f32.mrb[15].mxu0  ;;  %v2789_v41 = vpop.f32.mrb[15].mxu1 }
 0x18a   : > { %v3887_v42 = vpop.f32.mrb[16].mxu0  ;;  %v3889_v43 = vpop.f32.mrb[16].mxu1 }
 0x18b   : > { %v2730_v45 = vpop.f32.mrb[17].mxu0  ;;  %v2792_v46 = vpop.f32.mrb[17].mxu1 }
 0x18c   : > { %v3893_v47 = vpop.f32.mrb[18].mxu0  ;;  %v3895_v48 = vpop.f32.mrb[18].mxu1 }
 0x18d   : > { %v2731_v50 = vpop.f32.mrb[19].mxu0  ;;  %v2793_v51 = vpop.f32.mrb[19].mxu1 }
 0x192   : > { %v3899_v52 = vpop.f32.mrb[20].mxu0  ;;  %v3901_v53 = vpop.f32.mrb[20].mxu1 }
 0x193   : > { %v2734_v55 = vpop.f32.mrb[21].mxu0  ;;  %v2796_v56 = vpop.f32.mrb[21].mxu1 }
 0x194   : > { %v3905_v57 = vpop.f32.mrb[22].mxu0  ;;  %v3907_v58 = vpop.f32.mrb[22].mxu1 }
 0x195   : > { %v2735_v60 = vpop.f32.mrb[23].mxu0  ;;  %v2797_v61 = vpop.f32.mrb[23].mxu1 }
 0x19a   : > { %v3911_v62 = vpop.f32.mrb[24].mxu0  ;;  %v3913_v63 = vpop.f32.mrb[24].mxu1 }
 0x19b   : > { %v2738_v1 = vpop.f32.mrb[25].mxu0  ;;  %v2800_v6 = vpop.f32.mrb[25].mxu1 }
 0x19c   : > { %v3917_v7 = vpop.f32.mrb[26].mxu0  ;;  %v3919_v10 = vpop.f32.mrb[26].mxu1 }
 0x19d   : > { %v2739_v15 = vpop.f32.mrb[27].mxu0  ;;  %v2801_v16 = vpop.f32.mrb[27].mxu1 }
 0x1a2   : > { %v3923_v20 = vpop.f32.mrb[28].mxu0  ;;  %v3925_v21 = vpop.f32.mrb[28].mxu1 }
 0x1a3   : > { %v2742_v26 = vpop.f32.mrb[29].mxu0  ;;  %v2804_v30 = vpop.f32.mrb[29].mxu1 }
 0x1a4   : > { %v3929_v31 = vpop.f32.mrb[30].mxu0  ;;  %v3931_v35 = vpop.f32.mrb[30].mxu1 }
 0x1a5   : > { %v2743_v40 = vpop.f32.mrb[31].mxu0  ;;  %v2805_v41 = vpop.f32.mrb[31].mxu1 }
 0x1aa   : > { %v3935_v45 = vpop.f32.mrb[32].mxu0  ;;  %v3937_v46 = vpop.f32.mrb[32].mxu1 }
 0x1ab   : > { %v2746_v51 = vpop.f32.mrb[33].mxu0  ;;  %v2808_v55 = vpop.f32.mrb[33].mxu1 }
 0x1ac   : > { %v3941_v56 = vpop.f32.mrb[34].mxu0  ;;  %v3943_v60 = vpop.f32.mrb[34].mxu1 }
 0x1ad   : > { %v2747_v1 = vpop.f32.mrb[35].mxu0  ;;  %v2809_v6 = vpop.f32.mrb[35].mxu1 }
 0x1b2   : > { %v3947_v15 = vpop.f32.mrb[36].mxu0  ;;  %v3949_v16 = vpop.f32.mrb[36].mxu1 }
 0x1b3   : > { %v2750_v30 = vpop.f32.mrb[37].mxu0  ;;  %v2812_v40 = vpop.f32.mrb[37].mxu1 }
 0x1b4   : > { %v3953_v41 = vpop.f32.mrb[38].mxu0  ;;  %v3955_v51 = vpop.f32.mrb[38].mxu1 }
 0x1b5   : > { %v2751_v50 = vpop.f32.mrb[39].mxu0  ;;  %v2813_v61 = vpop.f32.mrb[39].mxu1 }
 0x1ba   : > { %v3959_v1 = vpop.f32.mrb[40].mxu0  ;;  %v3961_v6 = vpop.f32.mrb[40].mxu1 }
 0x1bb   : > { %v2754_v25 = vpop.f32.mrb[41].mxu0  ;;  %v2816_v26 = vpop.f32.mrb[41].mxu1 }
 0x1bc   : > { %v3965_v30 = vpop.f32.mrb[42].mxu0  ;;  %v3967_v40 = vpop.f32.mrb[42].mxu1 }
 0x1bd   : > { %v2755_v0 = vpop.f32.mrb[43].mxu0  ;;  %v2817_v55 = vpop.f32.mrb[43].mxu1 }
 0x1c2   : > { %v3971_v50 = vpop.f32.mrb[44].mxu0  ;;  %v3973_v61 = vpop.f32.mrb[44].mxu1 }
 0x1c3   : > { %v2758_v54 = vpop.f32.mrb[45].mxu0  ;;  %v2820_v36 = vpop.f32.mrb[45].mxu1 }
 0x1c4   : > { %v3977_v25 = vpop.f32.mrb[46].mxu0  ;;  %v3979_v26 = vpop.f32.mrb[46].mxu1 }
 0x1c5   : > { %4293 = vst [vmem:[#allocation4_spill] sm:$0xff] %v3979_v26  ;;  %v2759_v44 = vpop.f32.mrb[47].mxu0  ;;  %v2821_v11 = vpop.f32.mrb[47].mxu1 }
 0x1ca   : > { %v3983_v0 = vpop.f32.mrb[48].mxu0  ;;  %v3985_v55 = vpop.f32.mrb[48].mxu1 }
 0x1cb   : > { %4294 = vst [vmem:[#allocation5_spill] sm:$0xff] %v3983_v0  ;;  %4295 = vst [vmem:[#allocation6_spill] sm:$0xff] %v3985_v55  ;;  %v2762_v34 = vpop.f32.mrb[49].mxu0  ;;  %v2824_v59 = vpop.f32.mrb[49].mxu1 }
 0x1cc   : > { %v3989_v54 = vpop.f32.mrb[50].mxu0  ;;  %v3991_v36 = vpop.f32.mrb[50].mxu1  ;;  %v3998_v34 = vld [vmem:[%s4280_s2] ss:$0 sm:$0xff] }
 0x1cd   : > { %4296 = vst [vmem:[#allocation7_spill] sm:$0xff] %v3989_v54  ;;  %4297 = vst [vmem:[#allocation8_spill] sm:$0xff] %v3991_v36  ;;  %v2763_v49 = vpop.f32.mrb[51].mxu0  ;;  %v2825_v44 = vpop.f32.mrb[51].mxu1 }
 0x1d2   : > { %v1336_v11 = vpop.f32.mrb[52].mxu0  ;;  %v1604_v24 = vpop.f32.mrb[52].mxu1 }
 0x1d3   : > { %v1733_v19 = vmax.f32 %v1336_v11, %v1604_v24  ;;  %v2838_v14 = vpop.f32.mrb[53].mxu0  ;;  %v2900_v5 = vpop.f32.mrb[53].mxu1 }
 0x1d4   : > { %v1339_v59 = vpop.f32.mrb[54].mxu0  ;;  %v1607_v39 = vpop.f32.mrb[54].mxu1  ;;  %v4298_v5 = vmax.f32 %v3845_v8, %v3847_v9  ;;  %v4299_v9 = vmax.f32 %v3851_v12, %v3853_v13 }
 0x1d5   : > { %v1759_v55 = vmax.f32 %v1707_v4, %v1733_v19  ;;  %v1734_v0 = vmax.f32 %v1339_v59, %v1607_v39  ;;  %v2839_v29 = vpop.f32.mrb[55].mxu0  ;;  %v2901_v49 = vpop.f32.mrb[55].mxu1 }
 0x1d7   : > { %v1792_v24 = vadd.f32 %v3998_v34, %v1759_v55  ;;  %v1760_v14 = vmax.f32 %v4298_v5, %v1734_v0 }
 0x1d9   : > { %v1818_v44 = vmax.f32 %v1792_v24, 0.0  ;;  %v1793_v11 = vadd.f32 %v3998_v34, %v1760_v14 }
 0x1da   : > { %v1344_v36 = vpop.f32.mrb[56].mxu0  ;;  %v1612_v54 = vpop.f32.mrb[56].mxu1 }
 0x1db   : > { %v2603_v26 = vpack.c.bf16 %v1818_v44, %v1818_v44  ;;  %v1819_v2 = vmax.f32 %v1793_v11, 0.0  ;;  %v1735_v3 = vmax.f32 %v1344_v36, %v1612_v54  ;;  %v2842_v4 = vpop.f32.mrb[57].mxu0  ;;  %v2904_v19 = vpop.f32.mrb[57].mxu1  ;;  %v4300_v36 = vmax.f32 %v3857_v17, %v3859_v18 }
 0x1dc   : > { %v1347_v29 = vpop.f32.mrb[58].mxu0  ;;  %v1615_v39 = vpop.f32.mrb[58].mxu1  ;;  %v4301_v17 = vmax.f32 %v3863_v22, %v3865_v23 }
 0x1dd   : > { %1949 = vst.msk [vmem:[%s4010_s12] sm:$0xf] %vm1948_vm4, %v2603_v26  ;;  %v2604_v8 = vpack.c.bf16 %v1819_v2, %v1819_v2  ;;  %v1761_v0 = vmax.f32 %v4299_v9, %v1735_v3  ;;  %v1736_v55 = vmax.f32 %v1347_v29, %v1615_v39  ;;  %v2843_v59 = vpop.f32.mrb[59].mxu0  ;;  %v2905_v49 = vpop.f32.mrb[59].mxu1 }
 0x1df   : > { %1950 = vst.msk [vmem:[%s4010_s12 + $0x4] sm:$0xf] %vm1948_vm4, %v2604_v8  ;;  %v1794_v54 = vadd.f32 %v3998_v34, %v1761_v0  ;;  %v1762_v24 = vmax.f32 %v4300_v36, %v1736_v55  ;;  %v4302_v55 = vmax.f32 %v3869_v27, %v3871_v28  ;;  %v4303_v27 = vmax.f32 %v3875_v32, %v3877_v33 }
 0x1e1   : > { %v1820_v5 = vmax.f32 %v1794_v54, 0.0  ;;  %v1795_v26 = vadd.f32 %v3998_v34, %v1762_v24 }
 0x1e2   : > { %v1352_v14 = vpop.f32.mrb[60].mxu0  ;;  %v1620_v44 = vpop.f32.mrb[60].mxu1 }
 0x1e3   : > { %v2605_v12 = vpack.c.bf16 %v1820_v5, %v1820_v5  ;;  %v1821_v13 = vmax.f32 %v1795_v26, 0.0  ;;  %v1737_v11 = vmax.f32 %v1352_v14, %v1620_v44  ;;  %v2846_v2 = vpop.f32.mrb[61].mxu0  ;;  %v2908_v3 = vpop.f32.mrb[61].mxu1 }
 0x1e4   : > { %v1355_v4 = vpop.f32.mrb[62].mxu0  ;;  %v1623_v19 = vpop.f32.mrb[62].mxu1 }
 0x1e5   : > { %1951 = vst.msk [vmem:[%s4010_s12 + $0x8] sm:$0xf] %vm1948_vm4, %v2605_v12  ;;  %v2606_v29 = vpack.c.bf16 %v1821_v13, %v1821_v13  ;;  %v1763_v18 = vmax.f32 %v4301_v17, %v1737_v11  ;;  %v1738_v39 = vmax.f32 %v1355_v4, %v1623_v19  ;;  %v2847_v8 = vpop.f32.mrb[63].mxu0  ;;  %v2909_v9 = vpop.f32.mrb[63].mxu1  ;;  %v4304_v19 = vmax.f32 %v3881_v37, %v3883_v38 }
 0x1e6   : > { %v4305_v37 = vmax.f32 %v3887_v42, %v3889_v43 }
 0x1e7   : > { %1952 = vst.msk [vmem:[%s4010_s12 + $0xc] sm:$0xf] %vm1948_vm4, %v2606_v29  ;;  %v1796_v0 = vadd.f32 %v3998_v34, %v1763_v18  ;;  %v1764_v59 = vmax.f32 %v4302_v55, %v1738_v39 }
 0x1e9   : > { %v1822_v49 = vmax.f32 %v1796_v0, 0.0  ;;  %v1797_v54 = vadd.f32 %v3998_v34, %v1764_v59 }
 0x1ea   : > { %v1360_v36 = vpop.f32.mrb[64].mxu0  ;;  %v1628_v24 = vpop.f32.mrb[64].mxu1 }
 0x1eb   : > { %v2607_v22 = vpack.c.bf16 %v1822_v49, %v1822_v49  ;;  %v1823_v23 = vmax.f32 %v1797_v54, 0.0  ;;  %v1739_v5 = vmax.f32 %v1360_v36, %v1628_v24  ;;  %v2850_v26 = vpop.f32.mrb[65].mxu0  ;;  %v2912_v14 = vpop.f32.mrb[65].mxu1 }
 0x1ec   : > { %v1363_v44 = vpop.f32.mrb[66].mxu0  ;;  %v1631_v12 = vpop.f32.mrb[66].mxu1 }
 0x1ed   : > { %1953 = vst.msk [vmem:[%s4010_s12 + $0x10] sm:$0xf] %vm1948_vm4, %v2607_v22  ;;  %v2608_v13 = vpack.c.bf16 %v1823_v23, %v1823_v23  ;;  %v1765_v28 = vmax.f32 %v4303_v27, %v1739_v5  ;;  %v1740_v11 = vmax.f32 %v1363_v44, %v1631_v12  ;;  %v2851_v2 = vpop.f32.mrb[67].mxu0  ;;  %v2913_v3 = vpop.f32.mrb[67].mxu1  ;;  %v4306_v5 = vmax.f32 %v3893_v47, %v3895_v48 }
 0x1ee   : > { %v4307_v47 = vmax.f32 %v3899_v52, %v3901_v53 }
 0x1ef   : > { %1954 = vst.msk [vmem:[%s4010_s12 + $0x14] sm:$0xf] %vm1948_vm4, %v2608_v13  ;;  %v1798_v4 = vadd.f32 %v3998_v34, %v1765_v28  ;;  %v1766_v29 = vmax.f32 %v4304_v19, %v1740_v11 }
 0x1f1   : > { %v1824_v17 = vmax.f32 %v1798_v4, 0.0  ;;  %v1799_v18 = vadd.f32 %v3998_v34, %v1766_v29 }
 0x1f2   : > { %v1368_v39 = vpop.f32.mrb[68].mxu0  ;;  %v1636_v8 = vpop.f32.mrb[68].mxu1 }
 0x1f3   : > { %v2609_v32 = vpack.c.bf16 %v1824_v17, %v1824_v17  ;;  %v1825_v33 = vmax.f32 %v1799_v18, 0.0  ;;  %v1741_v9 = vmax.f32 %v1368_v39, %v1636_v8  ;;  %v2854_v0 = vpop.f32.mrb[69].mxu0  ;;  %v2916_v55 = vpop.f32.mrb[69].mxu1  ;;  %v4308_v39 = vmax.f32 %v3905_v57, %v3907_v58 }
 0x1f4   : > { %v1371_v59 = vpop.f32.mrb[70].mxu0  ;;  %v1639_v49 = vpop.f32.mrb[70].mxu1  ;;  %v4309_v57 = vmax.f32 %v3911_v62, %v3913_v63 }
 0x1f5   : > { %1955 = vst.msk [vmem:[%s4010_s12 + $0x18] sm:$0xf] %vm1948_vm4, %v2609_v32  ;;  %v2610_v54 = vpack.c.bf16 %v1825_v33, %v1825_v33  ;;  %v1767_v38 = vmax.f32 %v4305_v37, %v1741_v9  ;;  %v1742_v36 = vmax.f32 %v1371_v59, %v1639_v49  ;;  %v2855_v24 = vpop.f32.mrb[71].mxu0  ;;  %v2917_v22 = vpop.f32.mrb[71].mxu1 }
 0x1f7   : > { %1956 = vst.msk [vmem:[%s4010_s12 + $0x1c] sm:$0xf] %vm1948_vm4, %v2610_v54  ;;  %v1800_v23 = vadd.f32 %v3998_v34, %v1767_v38  ;;  %v1768_v26 = vmax.f32 %v4306_v5, %v1742_v36  ;;  %v4310_v5 = vmax.f32 %v3917_v7, %v3919_v10  ;;  %v4311_v7 = vmax.f32 %v3923_v20, %v3925_v21 }
 0x1f9   : > { %v1826_v14 = vmax.f32 %v1800_v23, 0.0  ;;  %v1801_v44 = vadd.f32 %v3998_v34, %v1768_v26 }
 0x1fa   : > { %v1376_v12 = vpop.f32.mrb[72].mxu0  ;;  %v1644_v13 = vpop.f32.mrb[72].mxu1 }
 0x1fb   : > { %v2611_v42 = vpack.c.bf16 %v1826_v14, %v1826_v14  ;;  %v1827_v43 = vmax.f32 %v1801_v44, 0.0  ;;  %v1743_v27 = vmax.f32 %v1376_v12, %v1644_v13  ;;  %v2858_v28 = vpop.f32.mrb[73].mxu0  ;;  %v2920_v11 = vpop.f32.mrb[73].mxu1 }
 0x1fc   : > { %v1379_v2 = vpop.f32.mrb[74].mxu0  ;;  %v1647_v3 = vpop.f32.mrb[74].mxu1 }
 0x1fd   : > { %1957 = vst.msk [vmem:[%s4010_s12 + $0x20] sm:$0xf] %vm1948_vm4, %v2611_v42  ;;  %v2612_v4 = vpack.c.bf16 %v1827_v43, %v1827_v43  ;;  %v1769_v48 = vmax.f32 %v4307_v47, %v1743_v27  ;;  %v1744_v19 = vmax.f32 %v1379_v2, %v1647_v3  ;;  %v2859_v29 = vpop.f32.mrb[75].mxu0  ;;  %v2921_v17 = vpop.f32.mrb[75].mxu1 }
 0x1ff   : > { %1958 = vst.msk [vmem:[%s4010_s12 + $0x24] sm:$0xf] %vm1948_vm4, %v2612_v4  ;;  %v1802_v18 = vadd.f32 %v3998_v34, %v1769_v48  ;;  %v1770_v8 = vmax.f32 %v4308_v39, %v1744_v19  ;;  %v4312_v19 = vmax.f32 %v3929_v31, %v3931_v35  ;;  %v4313_v31 = vmax.f32 %v3935_v45, %v3937_v46 }
 0x201   : > { %v1828_v32 = vmax.f32 %v1802_v18, 0.0  ;;  %v1803_v33 = vadd.f32 %v3998_v34, %v1770_v8 }
 0x202   : > { %v1384_v9 = vpop.f32.mrb[76].mxu0  ;;  %v1652_v0 = vpop.f32.mrb[76].mxu1 }
 0x203   : > { %v2613_v52 = vpack.c.bf16 %v1828_v32, %v1828_v32  ;;  %v1829_v53 = vmax.f32 %v1803_v33, 0.0  ;;  %v1745_v55 = vmax.f32 %v1384_v9, %v1652_v0  ;;  %v2862_v59 = vpop.f32.mrb[77].mxu0  ;;  %v2924_v49 = vpop.f32.mrb[77].mxu1 }
 0x204   : > { %v1387_v54 = vpop.f32.mrb[78].mxu0  ;;  %v1655_v37 = vpop.f32.mrb[78].mxu1 }
 0x205   : > { %1959 = vst.msk [vmem:[%s4010_s12 + $0x28] sm:$0xf] %vm1948_vm4, %v2613_v52  ;;  %v2614_v38 = vpack.c.bf16 %v1829_v53, %v1829_v53  ;;  %v1771_v58 = vmax.f32 %v4309_v57, %v1745_v55  ;;  %v1746_v36 = vmax.f32 %v1387_v54, %v1655_v37  ;;  %v2863_v24 = vpop.f32.mrb[79].mxu0  ;;  %v2925_v22 = vpop.f32.mrb[79].mxu1  ;;  %v4314_v37 = vmax.f32 %v3941_v56, %v3943_v60 }
 0x206   : > { %v4315_v56 = vmax.f32 %v3947_v15, %v3949_v16 }
 0x207   : > { %1960 = vst.msk [vmem:[%s4010_s12 + $0x2c] sm:$0xf] %vm1948_vm4, %v2614_v38  ;;  %v1804_v23 = vadd.f32 %v3998_v34, %v1771_v58  ;;  %v1772_v26 = vmax.f32 %v4310_v5, %v1746_v36 }
 0x209   : > { %v1830_v14 = vmax.f32 %v1804_v23, 0.0  ;;  %v1805_v44 = vadd.f32 %v3998_v34, %v1772_v26 }
 0x20a   : > { %v1392_v12 = vpop.f32.mrb[80].mxu0  ;;  %v1660_v13 = vpop.f32.mrb[80].mxu1 }
 0x20b   : > { %v2615_v62 = vpack.c.bf16 %v1830_v14, %v1830_v14  ;;  %v1831_v63 = vmax.f32 %v1805_v44, 0.0  ;;  %v1747_v42 = vmax.f32 %v1392_v12, %v1660_v13  ;;  %v2866_v43 = vpop.f32.mrb[81].mxu0  ;;  %v2928_v27 = vpop.f32.mrb[81].mxu1 }
 0x20c   : > { %v1395_v28 = vpop.f32.mrb[82].mxu0  ;;  %v1663_v11 = vpop.f32.mrb[82].mxu1 }
 0x20d   : > { %1961 = vst.msk [vmem:[%s4010_s12 + $0x30] sm:$0xf] %vm1948_vm4, %v2615_v62  ;;  %v2616_v2 = vpack.c.bf16 %v1831_v63, %v1831_v63  ;;  %v1773_v10 = vmax.f32 %v4311_v7, %v1747_v42  ;;  %v1748_v3 = vmax.f32 %v1395_v28, %v1663_v11  ;;  %v2867_v4 = vpop.f32.mrb[83].mxu0  ;;  %v2929_v47 = vpop.f32.mrb[83].mxu1  ;;  %v4316_v42 = vmax.f32 %v3953_v41, %v3955_v51 }
 0x20e   : > { %v4317_v41 = vmax.f32 %v3959_v1, %v3961_v6 }
 0x20f   : > { %1962 = vst.msk [vmem:[%s4010_s12 + $0x34] sm:$0xf] %vm1948_vm4, %v2616_v2  ;;  %v1806_v48 = vadd.f32 %v3998_v34, %v1773_v10  ;;  %v1774_v29 = vmax.f32 %v4312_v19, %v1748_v3 }
 0x211   : > { %v1832_v17 = vmax.f32 %v1806_v48, 0.0  ;;  %v1807_v18 = vadd.f32 %v3998_v34, %v1774_v29 }
 0x212   : > { %v1400_v39 = vpop.f32.mrb[84].mxu0  ;;  %v1668_v8 = vpop.f32.mrb[84].mxu1 }
 0x213   : > { %v2617_v20 = vpack.c.bf16 %v1832_v17, %v1832_v17  ;;  %v1833_v21 = vmax.f32 %v1807_v18, 0.0  ;;  %v1749_v32 = vmax.f32 %v1400_v39, %v1668_v8  ;;  %v2870_v33 = vpop.f32.mrb[85].mxu0  ;;  %v2932_v9 = vpop.f32.mrb[85].mxu1  ;;  %v4318_v39 = vmax.f32 %v3965_v30, %v3967_v40 }
 0x214   : > { %v1403_v0 = vpop.f32.mrb[86].mxu0  ;;  %v1671_v52 = vpop.f32.mrb[86].mxu1  ;;  %v4319_v30 = vmax.f32 %v3971_v50, %v3973_v61 }
 0x215   : > { %1963 = vst.msk [vmem:[%s4010_s12 + $0x38] sm:$0xf] %vm1948_vm4, %v2617_v20  ;;  %v2618_v53 = vpack.c.bf16 %v1833_v21, %v1833_v21  ;;  %v1775_v35 = vmax.f32 %v4313_v31, %v1749_v32  ;;  %v1750_v55 = vmax.f32 %v1403_v0, %v1671_v52  ;;  %v2871_v59 = vpop.f32.mrb[87].mxu0  ;;  %v2933_v49 = vpop.f32.mrb[87].mxu1 }
 0x217   : > { %1964 = vst.msk [vmem:[%s4010_s12 + $0x3c] sm:$0xf] %vm1948_vm4, %v2618_v53  ;;  %v1808_v54 = vadd.f32 %v3998_v34, %v1775_v35  ;;  %v1776_v38 = vmax.f32 %v4314_v37, %v1750_v55  ;;  %v4320_v37 = vld [vmem:[#allocation4_spill] sm:$0xff] }
 0x219   : > { %v1834_v57 = vmax.f32 %v1808_v54, 0.0  ;;  %v1809_v58 = vadd.f32 %v3998_v34, %v1776_v38  ;;  %v4321_v38 = vmax.f32 %v3977_v25, %v4320_v37  ;;  %v4322_v25 = vld [vmem:[#allocation5_spill] sm:$0xff] }
 0x21a   : > { %v1408_v36 = vpop.f32.mrb[88].mxu0  ;;  %v1676_v24 = vpop.f32.mrb[88].mxu1 }
 0x21b   : > { %v2619_v45 = vpack.c.bf16 %v1834_v57, %v1834_v57  ;;  %v1835_v46 = vmax.f32 %v1809_v58, 0.0  ;;  %v1751_v22 = vmax.f32 %v1408_v36, %v1676_v24  ;;  %v2874_v23 = vpop.f32.mrb[89].mxu0  ;;  %v2936_v5 = vpop.f32.mrb[89].mxu1 }
 0x21c   : > { %v1411_v26 = vpop.f32.mrb[90].mxu0  ;;  %v1679_v14 = vpop.f32.mrb[90].mxu1 }
 0x21d   : > { %1965 = vst.msk [vmem:[%s4010_s12 + $0x40] sm:$0xf] %vm1948_vm4, %v2619_v45  ;;  %v2620_v44 = vpack.c.bf16 %v1835_v46, %v1835_v46  ;;  %v1777_v60 = vmax.f32 %v4315_v56, %v1751_v22  ;;  %v1752_v12 = vmax.f32 %v1411_v26, %v1679_v14  ;;  %v2875_v13 = vpop.f32.mrb[91].mxu0  ;;  %v2937_v62 = vpop.f32.mrb[91].mxu1 }
 0x21f   : > { %1966 = vst.msk [vmem:[%s4010_s12 + $0x44] sm:$0xf] %vm1948_vm4, %v2620_v44  ;;  %v1810_v63 = vadd.f32 %v3998_v34, %v1777_v60  ;;  %v1778_v43 = vmax.f32 %v4316_v42, %v1752_v12  ;;  %v4323_v44 = vld [vmem:[#allocation6_spill] sm:$0xff]  ;;  %v4325_v42 = vld [vmem:[#allocation7_spill] sm:$0xff] }
 0x220   : > { %v4324_v56 = vmax.f32 %v4322_v25, %v4323_v44 }
 0x221   : > { %v1836_v27 = vmax.f32 %v1810_v63, 0.0  ;;  %v1811_v28 = vadd.f32 %v3998_v34, %v1778_v43  ;;  %v4326_v43 = vld [vmem:[#allocation8_spill] sm:$0xff] }
 0x222   : > { %v1416_v11 = vpop.f32.mrb[92].mxu0  ;;  %v1684_v2 = vpop.f32.mrb[92].mxu1 }
 0x223   : > { %v2621_v15 = vpack.c.bf16 %v1836_v27, %v1836_v27  ;;  %v1837_v16 = vmax.f32 %v1811_v28, 0.0  ;;  %v1753_v7 = vmax.f32 %v1416_v11, %v1684_v2  ;;  %v2878_v10 = vpop.f32.mrb[93].mxu0  ;;  %v2940_v3 = vpop.f32.mrb[93].mxu1  ;;  %v4327_v27 = vmax.f32 %v4325_v42, %v4326_v43 }
 0x224   : > { %v1419_v4 = vpop.f32.mrb[94].mxu0  ;;  %v1687_v47 = vpop.f32.mrb[94].mxu1 }
 0x225   : > { %1967 = vst.msk [vmem:[%s4010_s12 + $0x48] sm:$0xf] %vm1948_vm4, %v2621_v15  ;;  %v2622_v48 = vpack.c.bf16 %v1837_v16, %v1837_v16  ;;  %v1779_v51 = vmax.f32 %v4317_v41, %v1753_v7  ;;  %v1754_v19 = vmax.f32 %v1419_v4, %v1687_v47  ;;  %v2879_v29 = vpop.f32.mrb[95].mxu0  ;;  %v2941_v17 = vpop.f32.mrb[95].mxu1 }
 0x227   : > { %1968 = vst.msk [vmem:[%s4010_s12 + $0x4c] sm:$0xf] %vm1948_vm4, %v2622_v48  ;;  %v1812_v18 = vadd.f32 %v3998_v34, %v1779_v51  ;;  %v1780_v8 = vmax.f32 %v4318_v39, %v1754_v19 }
 0x229   : > { %v1838_v20 = vmax.f32 %v1812_v18, 0.0  ;;  %v1813_v21 = vadd.f32 %v3998_v34, %v1780_v8 }
 0x22a   : > { %v1424_v32 = vpop.f32.mrb[96].mxu0  ;;  %v1692_v33 = vpop.f32.mrb[96].mxu1 }
 0x22b   : > { %v2623_v1 = vpack.c.bf16 %v1838_v20, %v1838_v20  ;;  %v1839_v6 = vmax.f32 %v1813_v21, 0.0  ;;  %v1755_v9 = vmax.f32 %v1424_v32, %v1692_v33  ;;  %v2882_v0 = vpop.f32.mrb[97].mxu0  ;;  %v2944_v52 = vpop.f32.mrb[97].mxu1 }
 0x22c   : > { %v1427_v53 = vpop.f32.mrb[98].mxu0  ;;  %v1695_v31 = vpop.f32.mrb[98].mxu1 }
 0x22d   : > { %1969 = vst.msk [vmem:[%s4010_s12 + $0x50] sm:$0xf] %vm1948_vm4, %v2623_v1  ;;  %v2624_v35 = vpack.c.bf16 %v1839_v6, %v1839_v6  ;;  %v1781_v40 = vmax.f32 %v4319_v30, %v1755_v9  ;;  %v1756_v55 = vmax.f32 %v1427_v53, %v1695_v31  ;;  %v2883_v59 = vpop.f32.mrb[99].mxu0  ;;  %v2945_v49 = vpop.f32.mrb[99].mxu1 }
 0x22f   : > { %1970 = vst.msk [vmem:[%s4010_s12 + $0x54] sm:$0xf] %vm1948_vm4, %v2624_v35  ;;  %v1814_v54 = vadd.f32 %v3998_v34, %v1781_v40  ;;  %v1782_v57 = vmax.f32 %v4321_v38, %v1756_v55 }
 0x231   : > { %v1840_v58 = vmax.f32 %v1814_v54, 0.0  ;;  %v1815_v36 = vadd.f32 %v3998_v34, %v1782_v57 }
 0x232   : > { %v1432_v24 = vpop.f32.mrb[100].mxu0  ;;  %v1700_v45 = vpop.f32.mrb[100].mxu1 }
 0x233   : > { %v2625_v50 = vpack.c.bf16 %v1840_v58, %v1840_v58  ;;  %v1841_v61 = vmax.f32 %v1815_v36, 0.0  ;;  %v1757_v46 = vmax.f32 %v1432_v24, %v1700_v45  ;;  %v2886_v22 = vpop.f32.mrb[101].mxu0  ;;  %v2948_v23 = vpop.f32.mrb[101].mxu1 }
 0x234   : > { %v1435_v5 = vpop.f32.mrb[102].mxu0  ;;  %v1703_v26 = vpop.f32.mrb[102].mxu1 }
 0x235   : > { %1971 = vst.msk [vmem:[%s4010_s12 + $0x58] sm:$0xf] %vm1948_vm4, %v2625_v50  ;;  %v2626_v14 = vpack.c.bf16 %v1841_v61, %v1841_v61  ;;  %v1783_v60 = vmax.f32 %v4324_v56, %v1757_v46  ;;  %v1758_v12 = vmax.f32 %v1435_v5, %v1703_v26  ;;  %v2887_v13 = vpop.f32.mrb[103].mxu0  ;;  %v2949_v62 = vpop.f32.mrb[103].mxu1 }
 0x237   : > { %1972 = vst.msk [vmem:[%s4010_s12 + $0x5c] sm:$0xf] %vm1948_vm4, %v2626_v14  ;;  %v1816_v63 = vadd.f32 %v3998_v34, %v1783_v60  ;;  %v1784_v28 = vmax.f32 %v4327_v27, %v1758_v12 }
 0x239   : > { %v1842_v11 = vmax.f32 %v1816_v63, 0.0  ;;  %v1817_v2 = vadd.f32 %v3998_v34, %v1784_v28  ;;  %1981 = sbr.rel (!%p3376_p5) target bundleno = 655 (0x28f), region = 98 }
 0x23b   : > { %v2627_v15 = vpack.c.bf16 %v1842_v11, %v1842_v11  ;;  %v1843_v16 = vmax.f32 %v1817_v2, 0.0 }
 0x23d   : > { %1973 = vst.msk [vmem:[%s4010_s12 + $0x60] sm:$0xf] %vm1948_vm4, %v2627_v15  ;;  %v2628_v7 = vpack.c.bf16 %v1843_v16, %v1843_v16 }
 0x23f   : > { %1974 = vst.msk [vmem:[%s4010_s12 + $0x64] sm:$0xf] %vm1948_vm4, %v2628_v7 }
 0x240   : > { %s4341_s26 = smov (!%p1984_p4, %s1983_s26), 26 }
 0x241   : > { %s2588_s29 = sshll.u32 %s4341_s26, 6 }
 0x242   : > { %p2591_p6 = scmp.eq.s32.totalorder %s2588_s29, 0 }
 0x243   : > { %3166 = sdivrem.u32 (!%p2591_p6), %s4341_s26, 26 }
 0x244   : > { %1992 = sbr.rel (%p2591_p6) target bundleno = 655 (0x28f), region = 102 }
 0x24c   : > { %s4173_s20 = spop.drf %3166 }
 0x24d   : > { %p2592_p5 = scmp.le.s32.totalorder %s4173_s20, 0 }
 0x24e   : > { %s4328_s15 = smov (!%p2592_p5), %s4167_s28  ;;  %s4329_s30 = smov (!%p2592_p5), %s4010_s12 }
 0x24f   : > { %2313 = sbr.rel (%p2592_p5) target bundleno = 626 (0x272), region = 218  ;;  %s4182_s4 = smov (!%p2592_p5), 0  }
 0x250   : > { %s4184_s14 = smov (!%p2592_p5), 0  }
 0x256 LB: >> { %v2009_v34 = vld [vmem:[%s3296_s30] sm:$0xf]  ;;  %v2011_v10 = vld [vmem:[%s3296_s30 + $0x4] sm:$0xf]  ;;  %v2013_v3 = vld [vmem:[%s3296_s30 + $0x8] sm:$0xf]  ;;  %s3304_s14 = sphi %s4184_s14, %s2003_s14   ;;  %s3300_s4 = sphi %s4182_s4, %s4330_s4   ;;  %s3296_s30 = sphi %s4329_s30, %s2066_s30   ;;  %s3292_s15 = sphi %s4328_s15, %s2067_s15  }
 0x257   : >> { %2010 = vst [vmem:[%s3292_s15] sm:$0xf] %v2009_v34  ;;  %2012 = vst [vmem:[%s3292_s15 + $0x4] sm:$0xf] %v2011_v10  ;;  %v2015_v4 = vld [vmem:[%s3296_s30 + $0xc] sm:$0xf]  ;;  %s2061_s5 = sadd.s32 1, %s3300_s4 }
 0x258   : >> { %2014 = vst [vmem:[%s3292_s15 + $0x8] sm:$0xf] %v2013_v3  ;;  %v2017_v47 = vld [vmem:[%s3296_s30 + $0x10] sm:$0xf]  ;;  %v2019_v48 = vld [vmem:[%s3296_s30 + $0x14] sm:$0xf]  ;;  %p2062_p7 = scmp.ge.s32.totalorder %s2061_s5, %s4173_s20 }
 0x259   : >> { %2016 = vst [vmem:[%s3292_s15 + $0xc] sm:$0xf] %v2015_v4  ;;  %2018 = vst [vmem:[%s3292_s15 + $0x10] sm:$0xf] %v2017_v47  ;;  %v2021_v41 = vld [vmem:[%s3296_s30 + $0x18] sm:$0xf] }
 0x25a   : >> { %2020 = vst [vmem:[%s3292_s15 + $0x14] sm:$0xf] %v2019_v48  ;;  %v2023_v51 = vld [vmem:[%s3296_s30 + $0x1c] sm:$0xf]  ;;  %v2025_v19 = vld [vmem:[%s3296_s30 + $0x20] sm:$0xf] }
 0x25b   : >> { %2022 = vst [vmem:[%s3292_s15 + $0x18] sm:$0xf] %v2021_v41  ;;  %2024 = vst [vmem:[%s3292_s15 + $0x1c] sm:$0xf] %v2023_v51  ;;  %v2027_v29 = vld [vmem:[%s3296_s30 + $0x24] sm:$0xf] }
 0x25c   : >> { %2026 = vst [vmem:[%s3292_s15 + $0x20] sm:$0xf] %v2025_v19  ;;  %v2029_v17 = vld [vmem:[%s3296_s30 + $0x28] sm:$0xf]  ;;  %v2031_v18 = vld [vmem:[%s3296_s30 + $0x2c] sm:$0xf] }
 0x25d   : >> { %2028 = vst [vmem:[%s3292_s15 + $0x24] sm:$0xf] %v2027_v29  ;;  %2030 = vst [vmem:[%s3292_s15 + $0x28] sm:$0xf] %v2029_v17  ;;  %v2033_v39 = vld [vmem:[%s3296_s30 + $0x30] sm:$0xf] }
 0x25e   : >> { %2032 = vst [vmem:[%s3292_s15 + $0x2c] sm:$0xf] %v2031_v18  ;;  %v2035_v8 = vld [vmem:[%s3296_s30 + $0x34] sm:$0xf]  ;;  %v2037_v20 = vld [vmem:[%s3296_s30 + $0x38] sm:$0xf] }
 0x25f   : >> { %2034 = vst [vmem:[%s3292_s15 + $0x30] sm:$0xf] %v2033_v39  ;;  %2036 = vst [vmem:[%s3292_s15 + $0x34] sm:$0xf] %v2035_v8  ;;  %v2039_v21 = vld [vmem:[%s3296_s30 + $0x3c] sm:$0xf] }
 0x260   : >> { %2038 = vst [vmem:[%s3292_s15 + $0x38] sm:$0xf] %v2037_v20  ;;  %v2041_v32 = vld [vmem:[%s3296_s30 + $0x40] sm:$0xf]  ;;  %v2043_v33 = vld [vmem:[%s3296_s30 + $0x44] sm:$0xf] }
 0x261   : >> { %2040 = vst [vmem:[%s3292_s15 + $0x3c] sm:$0xf] %v2039_v21  ;;  %2042 = vst [vmem:[%s3292_s15 + $0x40] sm:$0xf] %v2041_v32  ;;  %v2045_v1 = vld [vmem:[%s3296_s30 + $0x48] sm:$0xf] }
 0x262   : >> { %2044 = vst [vmem:[%s3292_s15 + $0x44] sm:$0xf] %v2043_v33  ;;  %v2047_v6 = vld [vmem:[%s3296_s30 + $0x4c] sm:$0xf]  ;;  %v2049_v9 = vld [vmem:[%s3296_s30 + $0x50] sm:$0xf] }
 0x263   : >> { %2046 = vst [vmem:[%s3292_s15 + $0x48] sm:$0xf] %v2045_v1  ;;  %2048 = vst [vmem:[%s3292_s15 + $0x4c] sm:$0xf] %v2047_v6  ;;  %v2051_v0 = vld [vmem:[%s3296_s30 + $0x54] sm:$0xf] }
 0x264   : >> { %2050 = vst [vmem:[%s3292_s15 + $0x50] sm:$0xf] %v2049_v9  ;;  %v2053_v52 = vld [vmem:[%s3296_s30 + $0x58] sm:$0xf]  ;;  %v2055_v53 = vld [vmem:[%s3296_s30 + $0x5c] sm:$0xf] }
 0x265   : >> { %2052 = vst [vmem:[%s3292_s15 + $0x54] sm:$0xf] %v2051_v0  ;;  %2054 = vst [vmem:[%s3292_s15 + $0x58] sm:$0xf] %v2053_v52  ;;  %v2057_v31 = vld [vmem:[%s3296_s30 + $0x60] sm:$0xf] }
 0x266   : >> { %2056 = vst [vmem:[%s3292_s15 + $0x5c] sm:$0xf] %v2055_v53  ;;  %v2059_v35 = vld [vmem:[%s3296_s30 + $0x64] sm:$0xf]  ;;  %2058 = vst [vmem:[%s3292_s15 + $0x60] sm:$0xf] %v2057_v31 }
 0x267   : >> { %2060 = vst [vmem:[%s3292_s15 + $0x64] sm:$0xf] %v2059_v35  ;;  %s4343_s5 = smov (%p2062_p7, %s2061_s5), 0  ;;  %s2003_s14 = sadd.s32 1, %s3304_s14  }
 0x268   : >> { %s2064_s6 = smul.u32 104, %s4343_s5  ;;  %p2002_p8 = scmp.ge.s32.totalorder %s2003_s14, %s4173_s20 }
 0x269   : >> { %s4330_s4 = smov %s4343_s5 }
 0x26a   : >> { %s2066_s30 = scalar_lea.vmem %s4010_s12, %s2064_s6 [#allocation3]   ;;  %s2067_s15 = scalar_lea.vmem %s4167_s28, %s2064_s6  }
 0x26b   : > { %2005 = sbr.rel (!%p2002_p8) target bundleno = 598 (0x256), region = 224 }
 0x272 PF: > { %3168 = sdivrem.u32 %s4341_s26, 26 }
 0x273   : > { %s2593_s7 = smul.u32 104, %s4173_s20 }
 0x275   : > { %s2072_s8 = scalar_lea.vmem %s4010_s12, %s2593_s7 [#allocation3]   ;;  %s2074_s9 = scalar_lea.vmem %s4167_s28, %s2593_s7  }
 0x27b   : > { %s3169_s10 = spop.drf %3168 }
 0x27c   : > { %p2595_p9 = scmp.le.s32.totalorder %s3169_s10, 0 }
 0x27d   : > { %s3306_s11 = smov (!%p2595_p9), %s2074_s9   ;;  %s3310_s17 = smov (!%p2595_p9), %s2072_s8  }
 0x27e   : > { %2327 = sbr.rel (%p2595_p9) target bundleno = 655 (0x28f), region = 229  ;;  %s3314_s18 = smov (!%p2595_p9), 0  }
 0x27f   : > { %s3318_s21 = smov (!%p2595_p9), 0  }
 0x285 LB: >> { %v2084_v30 = vld [vmem:[%s3312_s17] sm:$0xf]  ;;  %s2086_s22 = sadd.s32 1, %s3316_s18  ;;  %s2078_s21 = sadd.s32 1, %s3320_s21   ;;  %s3320_s21 = sphi %s3318_s21, %s2078_s21   ;;  %s3316_s18 = sphi %s3314_s18, %s3315_s18   ;;  %s3312_s17 = sphi %s3310_s17, %s2091_s17   ;;  %s3308_s11 = sphi %s3306_s11, %s2092_s11  }
 0x286   : >> { %2085 = vst [vmem:[%s3308_s11] sm:$0xf] %v2084_v30  ;;  %p2087_p10 = scmp.ge.s32.totalorder %s2086_s22, %s3169_s10  ;;  %p2077_p11 = scmp.ge.s32.totalorder %s2078_s21, %s3169_s10 }
 0x288   : >> { %s4345_s22 = smov (%p2087_p10, %s2086_s22), 0  ;;  %2080 = sbr.rel (!%p2077_p11) target bundleno = 645 (0x285), region = 235 }
 0x289   : >> { %s2596_s12 = sshll.u32 %s4345_s22, 2  ;;  %s3315_s18 = smov %s4345_s22  }
 0x28a   : >> { %s2091_s17 = scalar_lea.vmem %s2072_s8, %s2596_s12 [#allocation3]   ;;  %s2092_s11 = scalar_lea.vmem %s2074_s9, %s2596_s12  }
 0x28f PF: > { %p10_p12 = scmp.ge.s32.totalorder %s3364_s16, 4   ;;  %s4331_s12 = smov %s3252_s13 }
 0x290   : > { %s4332_s13 = smov %s3374_s19  ;;  %s4333_s14 = smov %s3364_s16 }
 0x291   :  { %12 = sbr.rel (!%p10_p12) target bundleno = 2 (0x2), region = 246 }

// kernel: convnet_forward.4
= control target key start
LH: loop header
LB: loop body
LE: loop exit
PB: predicated region body
PF: predicated region fallthrough
CT: control target
= control target key end

     0   :  { %s1543_s12 = smov 0   ;;  %s1545_s13 = smov 0   ;;  %s1908_s0 = inlined_call_operand.vmem [shape: bf16[4,50,150], index: 0, kind: input, shape index: {}]   ;;  %s1909_s1 = inlined_call_operand.vmem [shape: bf16[150,16], index: 1, kind: input, shape index: {}]   ;;  %s1910_s2 = inlined_call_operand.vmem [shape: f32[1,16], index: 2, kind: input, shape index: {}]   ;;  %s1911_s3 = inlined_call_operand.vmem [shape: bf16[50,16], index: 3, kind: output, shape index: {}]  }
   0x1   :  { %s1547_s14 = smov 0  }
   0x2 LB: > { %s1559_s15 = sadd.s32 4294967295, %s1456_s14   ;;  %s1562_s16 = sadd.s32 1, %s1456_s14   ;;  %s1456_s14 = sphi %s1547_s14, %s1923_s14   ;;  %s1452_s13 = sphi %s1545_s13, %s1922_s13   ;;  %s1448_s12 = sphi %s1543_s12, %s1921_s12  }
   0x3   : > { %s17_s17 = ssub.s32 %s1456_s14, %s1562_s16  ;;  %s20_s18 = sadd.s32 1, %s1452_s13 }
   0x4   : > { %p18_p0 = scmp.eq.s32.totalorder %s17_s17, 0  ;;  %p27_p1 = scmp.ne.s32.totalorder %s1452_s13, %s1448_s12 }
   0x5   : > { %p28_p2 = scmp.eq.s32.totalorder %s1456_s14, 0  ;;  %p99_p3 = scmp.eq.s32.totalorder %s1559_s15, 1 }
   0x6   : > { %s1572_s19 = scalar_select %p18_p0, %s1452_s13, %s20_s18  }
   0x7   : > { %p29_p4 = por %p28_p2, %p27_p1  ;;  %p1574_p5 = por %p99_p3, %p27_p1 }
   0x8   : > { %p1082_p6 = scmp.ge.s32.totalorder %s1456_s14, 2 }
   0xa   : > { %127 = sbr.rel (%p1082_p6) target bundleno = 73 (0x49), region = 24 }
  0x11   : > { %130 = sbr.rel (!%p29_p4) target bundleno = 73 (0x49), region = 28  ;;  %s132_s21 = sand.u32 (%p29_p4), 1, %s1452_s13  }
  0x12   : > { %s1084_s22 = sshll.u32 (%p29_p4), %s1456_s14, 2  ;;  %s1083_s23 = sshll.u32 (%p29_p4), %s132_s21, 7 }
  0x13   : > { %s136_s24 = ssub.s32 (%p29_p4), 7, %s1084_s22  ;;  %s1173_s25 = sshll.u32 (%p29_p4), %s1456_s14, 5 }
  0x14   : > { %p137_p7 = scmp.lt.s32.totalorder (%p29_p4), %s136_s24, 4  ;;  %s1587_s28 = scalar_lea.vmem (%p29_p4), %s1908_s0, %s1173_s25  }
  0x15   : > { %s1590_s30 = scalar_lea.vmem (%p29_p4), [#allocation2], %s1083_s23  }
  0x18   : > { %s1925_s24 = smov (!%p137_p7, %s136_s24), 4 }
  0x19   : > { %s1171_s29 = sshll.u32 %s1925_s24, 9 }
  0x1a   : > { %p1090_p8 = scmp.eq.s32.totalorder %s1171_s29, 0 }
  0x1b   : > { %s1593_s4 = sshrl.u32 (!%p1090_p8), %s1925_s24, 2 }
  0x1c   : > { %147 = sbr.rel (%p1090_p8) target bundleno = 73 (0x49), region = 32  ;;  %p1091_p9 = scmp.le.s32.totalorder (!%p1090_p8), %s1593_s4, 0 }
  0x23   : > { %1008 = sbr.rel (%p1091_p9) target bundleno = 52 (0x34), region = 180  ;;  %s1913_s5 = smov (!%p1091_p9), %s1590_s30 }
  0x24   : > { %s1914_s6 = smov (!%p1091_p9), %s1587_s28  ;;  %s1602_s7 = smov (!%p1091_p9), 0  }
  0x25   : > { %s1604_s8 = smov (!%p1091_p9), 0  }
  0x2a LB: >> { %v245_v0 = vld [vmem:[%s1464_s6] sm:$0xff]  ;;  %v247_v1 = vld [vmem:[%s1464_s6 + $0x8] sm:$0xff]  ;;  %v249_v2 = vld [vmem:[%s1464_s6 + $0x10] sm:$0xff]  ;;  %s277_s9 = sadd.s32 1, %s1468_s7  ;;  %s239_s8 = sadd.s32 1, %s1472_s8   ;;  %s1472_s8 = sphi %s1604_s8, %s239_s8   ;;  %s1468_s7 = sphi %s1602_s7, %s1915_s7   ;;  %s1464_s6 = sphi %s1914_s6, %s282_s6   ;;  %s1460_s5 = sphi %s1913_s5, %s283_s5  }
  0x2b   : >> { %246 = vst [vmem:[%s1460_s5] sm:$0xff] %v245_v0  ;;  %248 = vst [vmem:[%s1460_s5 + $0x8] sm:$0xff] %v247_v1  ;;  %v251_v3 = vld [vmem:[%s1464_s6 + $0x18] sm:$0xff]  ;;  %v255_v5 = vld [vmem:[%s1464_s6 + $0x40] sm:$0xff]  ;;  %p278_p10 = scmp.ge.s32.totalorder %s277_s9, %s1593_s4  ;;  %p238_p11 = scmp.ge.s32.totalorder %s239_s8, %s1593_s4 }
  0x2c   : >> { %250 = vst [vmem:[%s1460_s5 + $0x10] sm:$0xff] %v249_v2  ;;  %v253_v4 = vld [vmem:[%s1464_s6 + $0x38] sm:$0xff]  ;;  %252 = vst [vmem:[%s1460_s5 + $0x18] sm:$0xff] %v251_v3  ;;  %v257_v6 = vld [vmem:[%s1464_s6 + $0x48] sm:$0xff] }
  0x2d   : >> { %254 = vst [vmem:[%s1460_s5 + $0x20] sm:$0xff] %v253_v4  ;;  %256 = vst [vmem:[%s1460_s5 + $0x28] sm:$0xff] %v255_v5  ;;  %v259_v7 = vld [vmem:[%s1464_s6 + $0x50] sm:$0xff]  ;;  %v263_v9 = vld [vmem:[%s1464_s6 + $0x78] sm:$0xff]  ;;  %s1927_s9 = smov (%p278_p10, %s277_s9), 0  ;;  %241 = sbr.rel (!%p238_p11) target bundleno = 42 (0x2a), region = 186 }
  0x2e   : >> { %v261_v8 = vld [vmem:[%s1464_s6 + $0x70] sm:$0xff]  ;;  %258 = vst [vmem:[%s1460_s5 + $0x30] sm:$0xff] %v257_v6  ;;  %260 = vst [vmem:[%s1460_s5 + $0x38] sm:$0xff] %v259_v7  ;;  %v265_v10 = vld [vmem:[%s1464_s6 + $0x80] sm:$0xff]  ;;  %s1092_s10 = sshll.u32 %s1927_s9, 5  ;;  %s1915_s7 = smov %s1927_s9 }
  0x2f   : >> { %262 = vst [vmem:[%s1460_s5 + $0x40] sm:$0xff] %v261_v8  ;;  %v267_v11 = vld [vmem:[%s1464_s6 + $0x88] sm:$0xff]  ;;  %264 = vst [vmem:[%s1460_s5 + $0x48] sm:$0xff] %v263_v9  ;;  %v271_v13 = vld [vmem:[%s1464_s6 + $0xb0] sm:$0xff] }
  0x30   : >> { %266 = vst [vmem:[%s1460_s5 + $0x50] sm:$0xff] %v265_v10  ;;  %268 = vst [vmem:[%s1460_s5 + $0x58] sm:$0xff] %v267_v11  ;;  %v269_v12 = vld [vmem:[%s1464_s6 + $0xa8] sm:$0xff]  ;;  %v273_v14 = vld [vmem:[%s1464_s6 + $0xb8] sm:$0xff] }
  0x31   : >> { %270 = vst [vmem:[%s1460_s5 + $0x60] sm:$0xff] %v269_v12  ;;  %272 = vst [vmem:[%s1460_s5 + $0x68] sm:$0xff] %v271_v13  ;;  %v275_v15 = vld [vmem:[%s1464_s6 + $0xc0] sm:$0xff]  ;;  %s282_s6 = scalar_lea.vmem %s1587_s28, %s1092_s10  }
  0x32   : >> { %274 = vst [vmem:[%s1460_s5 + $0x70] sm:$0xff] %v273_v14  ;;  %276 = vst [vmem:[%s1460_s5 + $0x78] sm:$0xff] %v275_v15  ;;  %s283_s5 = scalar_lea.vmem %s1590_s30, %s1092_s10 [#allocation2]  }
  0x34 PF: > { %s1662_s11 = sand.u32 3, %s1925_s24   ;;  %s1174_s17 = sshll.u32 %s1593_s4, 5 }
  0x35   : > { %s1666_s18 = scalar_lea.vmem %s1587_s28, %s1174_s17   ;;  %s1669_s21 = scalar_lea.vmem %s1590_s30, %s1174_s17 [#allocation2]  }
  0x36   : > { %p1097_p12 = scmp.le.s32.totalorder %s1662_s11, 0 }
  0x37   : > { %s1916_s22 = smov (!%p1097_p12), %s1669_s21  ;;  %s1917_s23 = smov (!%p1097_p12), %s1666_s18 }
  0x38   : > { %1022 = sbr.rel (%p1097_p12) target bundleno = 73 (0x49), region = 191  ;;  %s1482_s25 = smov (!%p1097_p12), 0  }
  0x39   : > { %s1486_s26 = smov (!%p1097_p12), 0  }
  0x3f LB: >> { %v300_v16 = vld [vmem:[%s1480_s23] sm:$0xff]  ;;  %v302_v17 = vld [vmem:[%s1480_s23 + $0x38] sm:$0xff]  ;;  %v304_v18 = vld [vmem:[%s1480_s23 + $0x70] sm:$0xff]  ;;  %s308_s24 = sadd.s32 1, %s1484_s25  ;;  %s294_s26 = sadd.s32 1, %s1488_s26   ;;  %s1488_s26 = sphi %s1486_s26, %s294_s26   ;;  %s1484_s25 = sphi %s1482_s25, %s1483_s25   ;;  %s1480_s23 = sphi %s1917_s23, %s313_s23   ;;  %s1476_s22 = sphi %s1916_s22, %s314_s22  }
  0x40   : >> { %301 = vst [vmem:[%s1476_s22] sm:$0xff] %v300_v16  ;;  %303 = vst [vmem:[%s1476_s22 + $0x20] sm:$0xff] %v302_v17  ;;  %v306_v19 = vld [vmem:[%s1480_s23 + $0xa8] sm:$0xff]  ;;  %p309_p13 = scmp.ge.s32.totalorder %s308_s24, %s1662_s11  ;;  %p293_p0 = scmp.ge.s32.totalorder %s294_s26, %s1662_s11 }
  0x41   : >> { %305 = vst [vmem:[%s1476_s22 + $0x40] sm:$0xff] %v304_v18  ;;  %307 = vst [vmem:[%s1476_s22 + $0x60] sm:$0xff] %v306_v19 }
  0x42   : >> { %s1929_s24 = smov (%p309_p13, %s308_s24), 0  ;;  %296 = sbr.rel (!%p293_p0) target bundleno = 63 (0x3f), region = 197 }
  0x43   : >> { %s1098_s27 = sshll.u32 %s1929_s24, 3  ;;  %s1483_s25 = smov %s1929_s24  }
  0x44   : >> { %s313_s23 = scalar_lea.vmem %s1666_s18, %s1098_s27   ;;  %s314_s22 = scalar_lea.vmem %s1669_s21, %s1098_s27 [#allocation2]  }
  0x49 PF: > { %p1100_p1 = scmp.ge.s32.totalorder %s1456_s14, 1  ;;  %p319_p2 = scmp.lt.s32.totalorder %s1456_s14, 3 }
  0x4b   : > { %p320_p3 = pnand %p1100_p1, %p319_p2 }
  0x4c   : > { %v1693_v20 = vld [vmem:[%s1909_s1] sm:$0xff] (!%p320_p3)   ;;  %v1522_v21 = vmov (!%p320_p3), 0   ;;  %v1702_v22 = vld [vmem:[%s1909_s1 + $0x8] sm:$0xff] (!%p320_p3)   ;;  %s326_s4 = sand.u32 (!%p320_p3), 1, %s1448_s12   ;;  %v1714_v23 = vld [vmem:[%s1909_s1 + $0x10] sm:$0xff] (!%p320_p3)   ;;  %vm458_vm0 = vcmask (!%p320_p3), 179200  }
  0x4d   : > { %323 = sbr.rel (%p320_p3) target bundleno = 443 (0x1bb), region = 80  ;;  %469 = vmatprep.subr.bf16.mxu0 (!%p320_p3), %v1522_v21  ;;  %547 = vmatprep.subr.bf16.mxu1 (!%p320_p3), %v1522_v21  ;;  %s1101_s5 = sshll.u32 (!%p320_p3), %s326_s4, 7  ;;  %v1725_v24 = vld [vmem:[%s1909_s1 + $0x18] sm:$0xff] (!%p320_p3)   ;;  %v1737_v27 = vld [vmem:[%s1909_s1 + $0x20] sm:$0xff] (!%p320_p3)   ;;  %v1747_v28 = vld [vmem:[%s1909_s1 + $0x28] sm:$0xff] (!%p320_p3)   ;;  %vm465_vm1 = vcmask (!%p320_p3), 1042432  }
  0x4e   : > { %470 = vmatpush1.bf16.msra.mxu0 (!%p320_p3), %v1693_v20  ;;  %548 = vmatpush1.bf16.msra.mxu1 (!%p320_p3), %v1693_v20  ;;  %s1718_s8 = scalar_lea.vmem (!%p320_p3), [#allocation2], %s1101_s5  ;;  %v1756_v29 = vld [vmem:[%s1909_s1 + $0x30] sm:$0xff] (!%p320_p3)   ;;  %v1765_v30 = vld [vmem:[%s1909_s1 + $0x38] sm:$0xff] (!%p320_p3)   ;;  %v1344_v31 = vld [vmem:[%s1909_s1 + $0x40] sm:$0xff] (!%p320_p3)   ;;  %s1102_s5 = sshll.u32 (!%p320_p3), %s326_s4, 4  ;;  %vm795_vm2 = vcmask (!%p320_p3), 125952  }
  0x4f   : > { %471 = vmatprep.subr.bf16.mxu0 (!%p320_p3), %v1522_v21  ;;  %549 = vmatprep.subr.bf16.mxu1 (!%p320_p3), %v1522_v21  ;;  %v1348_v25 = vld [vmem:[%s1718_s8 + $0x4] ss:$8 sps:$4 sm:$0xff] (!%p320_p3)   ;;  %v1345_v32 = vld [vmem:[%s1909_s1 + $0x48] ss:$0 sps:$4 sm:$0x77] (!%p320_p3)   ;;  %s1842_s6 = scalar_lea.vmem (!%p320_p3), [#allocation3], %s1102_s5  }
  0x50   : > { %1117 = vmatprep.mubr.msk.bf16.mxu0 (!%p320_p3), %vm458_vm0, %v1348_v25  ;;  %v1351_v26 = vld [vmem:[%s1718_s8 + $0x24] ss:$8 sps:$4 sm:$0xff] (!%p320_p3)   ;;  %v467_v33 = vsel (!%p320_p3), %vm465_vm1, %v1345_v32, 0  ;;  %v1346_v34 = vld [vmem:[%s1718_s8] ss:$8 sps:$4 sm:$0xff] (!%p320_p3)  }
  0x51   : > { %1127 = vmatprep.mubr.msk.bf16.mxu1 (!%p320_p3), %vm458_vm0, %v1351_v26  ;;  %v1349_v35 = vld [vmem:[%s1718_s8 + $0x20] ss:$8 sps:$4 sm:$0xff] (!%p320_p3)   ;;  %v1352_v36 = vld [vmem:[%s1718_s8 + $0x14] ss:$8 sps:$4 sm:$0xff] (!%p320_p3)   ;;  %v1356_v38 = vld [vmem:[%s1718_s8 + $0x10] ss:$8 sps:$4 sm:$0xff] (!%p320_p3)  }
  0x52   : > { %472 = vmatpush1.bf16.msra.mxu0 (!%p320_p3), %v1702_v22  ;;  %550 = vmatpush1.bf16.msra.mxu1 (!%p320_p3), %v1702_v22  ;;  %v1354_v37 = vld [vmem:[%s1718_s8 + $0x34] ss:$8 sps:$4 sm:$0xff] (!%p320_p3)   ;;  %v1357_v39 = vld [vmem:[%s1718_s8 + $0x30] ss:$8 sps:$4 sm:$0xff] (!%p320_p3)   ;;  %v1360_v40 = vld [vmem:[%s1718_s8 + $0x44] ss:$8 sps:$4 sm:$0xff] (!%p320_p3)  }
  0x53   : > { %473 = vmatprep.subr.bf16.mxu0 (!%p320_p3), %v1522_v21  ;;  %551 = vmatprep.subr.bf16.mxu1 (!%p320_p3), %v1522_v21  ;;  %v1363_v41 = vld [vmem:[%s1718_s8 + $0x64] ss:$8 sps:$4 sm:$0xff] (!%p320_p3)   ;;  %v1358_v42 = vld [vmem:[%s1718_s8 + $0x40] ss:$8 sps:$4 sm:$0xff] (!%p320_p3)   ;;  %v1364_v44 = vld [vmem:[%s1718_s8 + $0x54] ss:$8 sps:$4 sm:$0xff] (!%p320_p3)  }
  0x54   : > { %v1361_v43 = vld [vmem:[%s1718_s8 + $0x60] ss:$8 sps:$4 sm:$0xff]   ;;  %v1366_v45 = vld [vmem:[%s1718_s8 + $0x74] ss:$8 sps:$4 sm:$0xff]   ;;  %v1368_v46 = vld [vmem:[%s1718_s8 + $0x50] ss:$8 sps:$4 sm:$0xff]  }
  0x55   : > { %v1369_v47 = vld [vmem:[%s1718_s8 + $0x70] ss:$8 sps:$4 sm:$0xff]   ;;  %v1149_v9 = vld [vmem:[%s1910_s2] ss:$0 sm:$0xff]  ;;  %s1155_s12 = sshll.u32 (%p1574_p5), %s1559_s15, 2  ;;  %s1180_s4 = sshll.u32 (%p1574_p5), %s1559_s15, 4 }
  0x56   : > { %474 = vmatpush1.bf16.msra.mxu0 %v1714_v23  ;;  %552 = vmatpush1.bf16.msra.mxu1 %v1714_v23  ;;  %s808_s7 = ssub.s32 (%p1574_p5), 7, %s1155_s12  ;;  %s1859_s10 = scalar_lea.vmem (%p1574_p5), %s1911_s3, %s1180_s4  }
  0x57   : > { %475 = vmatprep.subr.bf16.mxu0 %v1522_v21  ;;  %553 = vmatprep.subr.bf16.mxu1 %v1522_v21  ;;  %p809_p4 = scmp.lt.s32.totalorder (%p1574_p5), %s808_s7, 4 }
  0x5a   : > { %476 = vmatpush1.bf16.msra.mxu0 %v1725_v24  ;;  %554 = vmatpush1.bf16.msra.mxu1 %v1725_v24 }
  0x5b   : > { %477 = vmatprep.subr.bf16.mxu0 %v1522_v21  ;;  %555 = vmatprep.subr.bf16.mxu1 %v1522_v21 }
  0x5e   : > { %478 = vmatpush1.bf16.msra.mxu0 %v1737_v27  ;;  %556 = vmatpush1.bf16.msra.mxu1 %v1737_v27 }
  0x5f   : > { %479 = vmatprep.subr.bf16.mxu0 %v1522_v21  ;;  %557 = vmatprep.subr.bf16.mxu1 %v1522_v21 }
  0x62   : > { %480 = vmatpush1.bf16.msra.mxu0 %v1747_v28  ;;  %558 = vmatpush1.bf16.msra.mxu1 %v1747_v28 }
  0x63   : > { %481 = vmatprep.subr.bf16.mxu0 %v1522_v21  ;;  %559 = vmatprep.subr.bf16.mxu1 %v1522_v21 }
  0x66   : > { %482 = vmatpush1.bf16.msra.mxu0 %v1756_v29  ;;  %560 = vmatpush1.bf16.msra.mxu1 %v1756_v29 }
  0x67   : > { %483 = vmatprep.subr.bf16.mxu0 %v1522_v21  ;;  %561 = vmatprep.subr.bf16.mxu1 %v1522_v21 }
  0x6a   : > { %484 = vmatpush1.bf16.msra.mxu0 %v1765_v30  ;;  %562 = vmatpush1.bf16.msra.mxu1 %v1765_v30 }
  0x6b   : > { %485 = vmatprep.subr.bf16.mxu0 %v1522_v21  ;;  %563 = vmatprep.subr.bf16.mxu1 %v1522_v21 }
  0x6e   : > { %486 = vmatpush1.bf16.msra.mxu0 %v1344_v31  ;;  %564 = vmatpush1.bf16.msra.mxu1 %v1344_v31 }
  0x6f   : > { %487 = vmatprep.subr.bf16.mxu0 %v1522_v21  ;;  %565 = vmatprep.subr.bf16.mxu1 %v1522_v21 }
  0x72   : > { %488 = vmatpush1.bf16.msra.mxu0 %v467_v33  ;;  %566 = vmatpush1.bf16.msra.mxu1 %v467_v33 }
  0x73   : > { %625 = vmatprep.subr.bf16.mxu0 %v1522_v21  ;;  %703 = vmatprep.subr.bf16.mxu1 %v1522_v21 }
  0x75   : > { %502 = vmatmul.mubr.bf16.vlgmr.msra.gmra.mrb[0].mxu0 %v1346_v34  ;;  %580 = vmatmul.mubr.bf16.vlgmr.msra.gmra.mrb[0].mxu1 %v1349_v35 }
  0x76   : > { %626 = vmatpush1.bf16.msra.mxu0 %v1693_v20  ;;  %704 = vmatpush1.bf16.msra.mxu1 %v1693_v20 }
  0x77   : > { %627 = vmatprep.subr.bf16.mxu0 %v1522_v21  ;;  %705 = vmatprep.subr.bf16.mxu1 %v1522_v21 }
  0x78   : > { %1118 = vmatprep.mubr.msk.bf16.mxu0 %vm458_vm0, %v1352_v36  ;;  %1128 = vmatprep.mubr.msk.bf16.mxu1 %vm458_vm0, %v1354_v37 }
  0x7a   : > { %628 = vmatpush1.bf16.msra.mxu0 %v1702_v22  ;;  %706 = vmatpush1.bf16.msra.mxu1 %v1702_v22 }
  0x7b   : > { %629 = vmatprep.subr.bf16.mxu0 %v1522_v21  ;;  %707 = vmatprep.subr.bf16.mxu1 %v1522_v21 }
  0x7d   : > { %510 = vmatmul.mubr.bf16.gmra.mrb[4].mxu0 %v1356_v38  ;;  %588 = vmatmul.mubr.bf16.gmra.mrb[4].mxu1 %v1357_v39 }
  0x7e   : > { %630 = vmatpush1.bf16.msra.mxu0 %v1714_v23  ;;  %708 = vmatpush1.bf16.msra.mxu1 %v1714_v23 }
  0x7f   : > { %631 = vmatprep.subr.bf16.mxu0 %v1522_v21  ;;  %709 = vmatprep.subr.bf16.mxu1 %v1522_v21 }
  0x80   : > { %1137 = vmatprep.mubr.msk.bf16.mxu0 %vm458_vm0, %v1360_v40  ;;  %1147 = vmatprep.mubr.msk.bf16.mxu1 %vm458_vm0, %v1363_v41 }
  0x82   : > { %632 = vmatpush1.bf16.msra.mxu0 %v1725_v24  ;;  %710 = vmatpush1.bf16.msra.mxu1 %v1725_v24 }
  0x83   : > { %633 = vmatprep.subr.bf16.mxu0 %v1522_v21  ;;  %711 = vmatprep.subr.bf16.mxu1 %v1522_v21 }
  0x86   : > { %634 = vmatpush1.bf16.msra.mxu0 %v1737_v27  ;;  %712 = vmatpush1.bf16.msra.mxu1 %v1737_v27 }
  0x87   : > { %635 = vmatprep.subr.bf16.mxu0 %v1522_v21  ;;  %713 = vmatprep.subr.bf16.mxu1 %v1522_v21 }
  0x8a   : > { %636 = vmatpush1.bf16.msra.mxu0 %v1747_v28  ;;  %714 = vmatpush1.bf16.msra.mxu1 %v1747_v28 }
  0x8b   : > { %637 = vmatprep.subr.bf16.mxu0 %v1522_v21  ;;  %715 = vmatprep.subr.bf16.mxu1 %v1522_v21 }
  0x8e   : > { %638 = vmatpush1.bf16.msra.mxu0 %v1756_v29  ;;  %716 = vmatpush1.bf16.msra.mxu1 %v1756_v29 }
  0x8f   : > { %639 = vmatprep.subr.bf16.mxu0 %v1522_v21  ;;  %717 = vmatprep.subr.bf16.mxu1 %v1522_v21 }
  0x92   : > { %640 = vmatpush1.bf16.msra.mxu0 %v1765_v30  ;;  %718 = vmatpush1.bf16.msra.mxu1 %v1765_v30 }
  0x93   : > { %641 = vmatprep.subr.bf16.mxu0 %v1522_v21  ;;  %719 = vmatprep.subr.bf16.mxu1 %v1522_v21 }
  0x96   : > { %642 = vmatpush1.bf16.msra.mxu0 %v1344_v31  ;;  %720 = vmatpush1.bf16.msra.mxu1 %v1344_v31 }
  0x97   : > { %643 = vmatprep.subr.bf16.mxu0 %v1522_v21  ;;  %721 = vmatprep.subr.bf16.mxu1 %v1522_v21 }
  0x9a   : > { %644 = vmatpush1.bf16.msra.mxu0 %v467_v33  ;;  %722 = vmatpush1.bf16.msra.mxu1 %v467_v33 }
  0x9d   : > { %658 = vmatmul.mubr.bf16.vlgmr.msra.gmra.mrb[8].mxu0 %v1358_v42  ;;  %736 = vmatmul.mubr.bf16.vlgmr.msra.gmra.mrb[8].mxu1 %v1361_v43 }
  0x9e   : > { %1138 = vmatprep.mubr.msk.bf16.mxu0 %vm458_vm0, %v1364_v44  ;;  %1148 = vmatprep.mubr.msk.bf16.mxu1 %vm458_vm0, %v1366_v45 }
  0xa5   : > { %666 = vmatmul.mubr.bf16.gmra.mrb[12].mxu0 %v1368_v46  ;;  %744 = vmatmul.mubr.bf16.gmra.mrb[12].mxu1 %v1369_v47 }
 0x148   : > { %v503_v48 = vpop.f32.mrb[0].mxu0  ;;  %v581_v49 = vpop.f32.mrb[0].mxu1 }
 0x149   : > { %v752_v50 = vmax.f32 %v503_v48, %v581_v49  ;;  %v505_v51 = vpop.f32.mrb[1].mxu0  ;;  %v583_v52 = vpop.f32.mrb[1].mxu1 }
 0x14a   : > { %v506_v53 = vpop.f32.mrb[2].mxu0  ;;  %v584_v54 = vpop.f32.mrb[2].mxu1 }
 0x14b   : > { %v753_v55 = vmax.f32 %v506_v53, %v584_v54  ;;  %v508_v56 = vpop.f32.mrb[3].mxu0  ;;  %v586_v57 = vpop.f32.mrb[3].mxu1 }
 0x150   : > { %v511_v58 = vpop.f32.mrb[4].mxu0  ;;  %v589_v59 = vpop.f32.mrb[4].mxu1 }
 0x151   : > { %v754_v60 = vmax.f32 %v511_v58, %v589_v59  ;;  %v513_v61 = vpop.f32.mrb[5].mxu0  ;;  %v591_v62 = vpop.f32.mrb[5].mxu1 }
 0x152   : > { %v514_v63 = vpop.f32.mrb[6].mxu0  ;;  %v592_v0 = vpop.f32.mrb[6].mxu1 }
 0x153   : > { %v755_v1 = vmax.f32 %v514_v63, %v592_v0  ;;  %v516_v2 = vpop.f32.mrb[7].mxu0  ;;  %v594_v3 = vpop.f32.mrb[7].mxu1 }
 0x170   : > { %v659_v4 = vpop.f32.mrb[8].mxu0  ;;  %v737_v5 = vpop.f32.mrb[8].mxu1 }
 0x171   : > { %v756_v6 = vmax.f32 %v659_v4, %v737_v5  ;;  %v661_v7 = vpop.f32.mrb[9].mxu0  ;;  %v739_v8 = vpop.f32.mrb[9].mxu1 }
 0x172   : > { %v662_v10 = vpop.f32.mrb[10].mxu0  ;;  %v740_v11 = vpop.f32.mrb[10].mxu1 }
 0x173   : > { %v760_v12 = vmax.f32 %v752_v50, %v756_v6  ;;  %v757_v13 = vmax.f32 %v662_v10, %v740_v11  ;;  %v664_v14 = vpop.f32.mrb[11].mxu0  ;;  %v742_v15 = vpop.f32.mrb[11].mxu1 }
 0x175   : > { %v771_v16 = vadd.f32 %v1149_v9, %v760_v12  ;;  %v761_v17 = vmax.f32 %v753_v55, %v757_v13 }
 0x177   : > { %v775_v18 = vmax.f32 %v771_v16, 0.0  ;;  %v772_v19 = vadd.f32 %v1149_v9, %v761_v17 }
 0x178   : > { %v667_v20 = vpop.f32.mrb[12].mxu0  ;;  %v745_v21 = vpop.f32.mrb[12].mxu1 }
 0x179   : > { %v1176_v22 = vpack.c.bf16 %v775_v18, %v775_v18  ;;  %v776_v23 = vmax.f32 %v772_v19, 0.0  ;;  %v758_v24 = vmax.f32 %v667_v20, %v745_v21  ;;  %v669_v25 = vpop.f32.mrb[13].mxu0  ;;  %v747_v26 = vpop.f32.mrb[13].mxu1 }
 0x17a   : > { %v670_v27 = vpop.f32.mrb[14].mxu0  ;;  %v748_v28 = vpop.f32.mrb[14].mxu1 }
 0x17b   : > { %796 = vst.msk [vmem:[%s1842_s6] sm:$0xf] %vm795_vm2, %v1176_v22  ;;  %v1177_v29 = vpack.c.bf16 %v776_v23, %v776_v23  ;;  %v762_v30 = vmax.f32 %v754_v60, %v758_v24  ;;  %v759_v31 = vmax.f32 %v670_v27, %v748_v28  ;;  %v672_v32 = vpop.f32.mrb[15].mxu0  ;;  %v750_v33 = vpop.f32.mrb[15].mxu1 }
 0x17d   : > { %797 = vst.msk [vmem:[%s1842_s6 + $0x4] sm:$0xf] %vm795_vm2, %v1177_v29  ;;  %v773_v34 = vadd.f32 %v1149_v9, %v762_v30  ;;  %v763_v35 = vmax.f32 %v755_v1, %v759_v31 }
 0x17f   : > { %v777_v36 = vmax.f32 %v773_v34, 0.0  ;;  %v774_v37 = vadd.f32 %v1149_v9, %v763_v35  ;;  %806 = sbr.rel (!%p1574_p5) target bundleno = 443 (0x1bb), region = 88 }
 0x181   : > { %v1178_v38 = vpack.c.bf16 %v777_v36, %v777_v36  ;;  %v778_v39 = vmax.f32 %v774_v37, 0.0 }
 0x183   : > { %798 = vst.msk [vmem:[%s1842_s6 + $0x8] sm:$0xf] %vm795_vm2, %v1178_v38  ;;  %v1179_v40 = vpack.c.bf16 %v778_v39, %v778_v39 }
 0x185   : > { %799 = vst.msk [vmem:[%s1842_s6 + $0xc] sm:$0xf] %vm795_vm2, %v1179_v40 }
 0x186   : > { %s1931_s7 = smov (!%p809_p4, %s808_s7), 4 }
 0x187   : > { %s1156_s11 = sshll.u32 %s1931_s7, 6 }
 0x188   : > { %p1159_p6 = scmp.eq.s32.totalorder %s1156_s11, 0 }
 0x189   : > { %s1865_s20 = sshrl.u32 (!%p1159_p6), %s1931_s7, 2 }
 0x18a   : > { %817 = sbr.rel (%p1159_p6) target bundleno = 443 (0x1bb), region = 92  ;;  %p1160_p5 = scmp.le.s32.totalorder (!%p1159_p6), %s1865_s20, 0 }
 0x191   : > { %1036 = sbr.rel (%p1160_p5) target bundleno = 422 (0x1a6), region = 202  ;;  %s1918_s15 = smov (!%p1160_p5), %s1859_s10 }
 0x192   : > { %s1919_s17 = smov (!%p1160_p5), %s1842_s6  ;;  %s1874_s18 = smov (!%p1160_p5), 0  }
 0x193   : > { %s1502_s21 = smov (!%p1160_p5), 0  }
 0x198 LB: >> { %v833_v41 = vld [vmem:[%s1496_s17] sm:$0xf]  ;;  %v835_v42 = vld [vmem:[%s1496_s17 + $0x4] sm:$0xf]  ;;  %v837_v43 = vld [vmem:[%s1496_s17 + $0x8] sm:$0xf]  ;;  %s1504_s21 = sphi %s1502_s21, %s827_s21   ;;  %s1500_s18 = sphi %s1874_s18, %s1920_s18   ;;  %s1496_s17 = sphi %s1919_s17, %s846_s17   ;;  %s1492_s15 = sphi %s1918_s15, %s847_s15  }
 0x199   : >> { %834 = vst [vmem:[%s1492_s15] sm:$0xf] %v833_v41  ;;  %836 = vst [vmem:[%s1492_s15 + $0x4] sm:$0xf] %v835_v42  ;;  %v839_v44 = vld [vmem:[%s1496_s17 + $0xc] sm:$0xf]  ;;  %s841_s22 = sadd.s32 1, %s1500_s18 }
 0x19a   : >> { %838 = vst [vmem:[%s1492_s15 + $0x8] sm:$0xf] %v837_v43  ;;  %840 = vst [vmem:[%s1492_s15 + $0xc] sm:$0xf] %v839_v44  ;;  %p842_p7 = scmp.ge.s32.totalorder %s841_s22, %s1865_s20  ;;  %s827_s21 = sadd.s32 1, %s1504_s21  }
 0x19b   : >> { %p826_p8 = scmp.ge.s32.totalorder %s827_s21, %s1865_s20 }
 0x19c   : >> { %s1933_s22 = smov (%p842_p7, %s841_s22), 0 }
 0x19d   : >> { %s1161_s23 = sshll.u32 %s1933_s22, 4  ;;  %s1920_s18 = smov %s1933_s22 }
 0x19e   : >> { %s846_s17 = scalar_lea.vmem %s1842_s6, %s1161_s23 [#allocation3]   ;;  %s847_s15 = scalar_lea.vmem %s1859_s10, %s1161_s23  }
 0x19f   : > { %829 = sbr.rel (!%p826_p8) target bundleno = 408 (0x198), region = 208 }
 0x1a6 PF: > { %s1890_s25 = sand.u32 3, %s1931_s7   ;;  %s1181_s26 = sshll.u32 %s1865_s20, 4 }
 0x1a7   : > { %s852_s24 = scalar_lea.vmem %s1842_s6, %s1181_s26 [#allocation3]   ;;  %s854_s27 = scalar_lea.vmem %s1859_s10, %s1181_s26  }
 0x1a8   : > { %p1166_p9 = scmp.le.s32.totalorder %s1890_s25, 0 }
 0x1a9   : > { %s1506_s28 = smov (!%p1166_p9), %s854_s27   ;;  %s1510_s29 = smov (!%p1166_p9), %s852_s24  }
 0x1aa   : > { %1050 = sbr.rel (%p1166_p9) target bundleno = 443 (0x1bb), region = 213  ;;  %s1514_s30 = smov (!%p1166_p9), 0  }
 0x1ab   : > { %s1518_s14 = smov (!%p1166_p9), 0  }
 0x1b1 LB: >> { %v864_v45 = vld [vmem:[%s1512_s29] sm:$0xf]  ;;  %s866_s5 = sadd.s32 1, %s1516_s30  ;;  %s858_s14 = sadd.s32 1, %s1520_s14   ;;  %s1520_s14 = sphi %s1518_s14, %s858_s14   ;;  %s1516_s30 = sphi %s1514_s30, %s1515_s30   ;;  %s1512_s29 = sphi %s1510_s29, %s871_s29   ;;  %s1508_s28 = sphi %s1506_s28, %s872_s28  }
 0x1b2   : >> { %865 = vst [vmem:[%s1508_s28] sm:$0xf] %v864_v45  ;;  %p867_p10 = scmp.ge.s32.totalorder %s866_s5, %s1890_s25  ;;  %p857_p11 = scmp.ge.s32.totalorder %s858_s14, %s1890_s25 }
 0x1b4   : >> { %s1935_s5 = smov (%p867_p10, %s866_s5), 0  ;;  %860 = sbr.rel (!%p857_p11) target bundleno = 433 (0x1b1), region = 219 }
 0x1b5   : >> { %s1167_s6 = sshll.u32 %s1935_s5, 2  ;;  %s1515_s30 = smov %s1935_s5  }
 0x1b6   : >> { %s871_s29 = scalar_lea.vmem %s852_s24, %s1167_s6 [#allocation3]   ;;  %s872_s28 = scalar_lea.vmem %s854_s27, %s1167_s6  }
 0x1bb PF: > { %p10_p12 = scmp.ge.s32.totalorder %s1562_s16, 4   ;;  %s1921_s12 = smov %s1452_s13 }
 0x1bc   : > { %s1922_s13 = smov %s1572_s19  ;;  %s1923_s14 = smov %s1562_s16 }
 0x1bd   :  { %12 = sbr.rel (!%p10_p12) target bundleno = 2 (0x2), region = 230 }

// kernel: convnet_forward.5
= control target key start
LH: loop header
LB: loop body
LE: loop exit
PB: predicated region body
PF: predicated region fallthrough
CT: control target
= control target key end

     0   :  { %v770_v1 = vmov 0   ;;  %v98_v20 = vlaneseq  ;;  %v771_v25 = vmov 1966171168   ;;  %vm264_vm0 = vcmask 130048   ;;  %s981_s0 = inlined_call_operand.vmem [shape: bf16[2,400], index: 0, kind: input, shape index: {}]   ;;  %s982_s1 = inlined_call_operand.vmem [shape: bf16[400,120], index: 1, kind: input, shape index: {}]   ;;  %s983_s2 = inlined_call_operand.vmem [shape: f32[1,120], index: 2, kind: input, shape index: {}]   ;;  %s984_s3 = inlined_call_operand.vmem [shape: bf16[120,84], index: 3, kind: input, shape index: {}]   ;;  %s985_s4 = inlined_call_operand.vmem [shape: f32[1,84], index: 4, kind: input, shape index: {}]   ;;  %s986_s5 = inlined_call_operand.vmem [shape: bf16[84,10], index: 5, kind: input, shape index: {}]   ;;  %s987_s6 = inlined_call_operand.vmem [shape: f32[1,10], index: 6, kind: input, shape index: {}]   ;;  %s988_s7 = inlined_call_operand.hbm [shape: f32[2,10], index: 7, kind: output, shape index: {}]  }
   0x1   :  { %v707_v0 = vld [vmem:[%s982_s1 + $0x40] sm:$0xff]   ;;  %308 = vmatprep.subr.bf16.mxu1 %v770_v1  ;;  %v710_v4 = vld [vmem:[%s982_s1 + $0x48] sm:$0xff]   ;;  %v713_v7 = vld [vmem:[%s982_s1 + $0x50] sm:$0xff]   ;;  %v96_v26 = vunpack.c.l.s4 %v771_v25  ;;  %v772_v38 = vmov 0.0  }
   0x2   :  { %v708_v2 = vld [vmem:[%s982_s1 + $0x80] sm:$0xff]   ;;  %628 = vmatprep.subr.bf16.mxu0 %v707_v0  ;;  %v711_v5 = vld [vmem:[%s982_s1 + $0x88] sm:$0xff]   ;;  %v714_v8 = vld [vmem:[%s982_s1 + $0x90] sm:$0xff]   ;;  %v99_v27 = vshrl.u32 %v98_v20, 7 }
   0x3   :  { %v709_v3 = vld [vmem:[%s982_s1] sm:$0xff]   ;;  %309 = vmatpush1.bf16.msra.mxu1 %v708_v2  ;;  %v712_v6 = vld [vmem:[%s982_s1 + $0x8] sm:$0xff]   ;;  %v715_v9 = vld [vmem:[%s982_s1 + $0x10] sm:$0xff]   ;;  %v97_v30 = vunpack.c.0.s8 %v96_v26 }
   0x4   :  { %629 = vmatpush3.bf16.msra.mxu0 %v709_v3  ;;  %310 = vmatprep.subr.bf16.mxu1 %v770_v1  ;;  %v716_v10 = vld [vmem:[%s982_s1 + $0x58] sm:$0xff]   ;;  %v719_v13 = vld [vmem:[%s982_s1 + $0x60] sm:$0xff]   ;;  %v722_v16 = vld [vmem:[%s982_s1 + $0x68] sm:$0xff]  }
   0x5   :  { %630 = vmatprep.subr.bf16.mxu0 %v710_v4  ;;  %v717_v11 = vld [vmem:[%s982_s1 + $0x98] sm:$0xff]   ;;  %v720_v14 = vld [vmem:[%s982_s1 + $0xa0] sm:$0xff]   ;;  %v723_v17 = vld [vmem:[%s982_s1 + $0xa8] sm:$0xff]   ;;  %v100_v32 = vsub.s32 %v97_v30, %v99_v27 }
   0x6   :  { %v718_v12 = vld [vmem:[%s982_s1 + $0x18] sm:$0xff]   ;;  %v721_v15 = vld [vmem:[%s982_s1 + $0x20] sm:$0xff]   ;;  %v724_v18 = vld [vmem:[%s982_s1 + $0x28] sm:$0xff]  }
   0x7   :  { %311 = vmatpush1.bf16.msra.mxu1 %v711_v5  ;;  %v725_v19 = vld [vmem:[%s982_s1 + $0x70] sm:$0xff]   ;;  %v583_v23 = vld.sshfl [vmem:[%s981_s0] sm:$0x33 pattern:$0x75316420]  ;;  %v728_v24 = vld [vmem:[%s982_s1 + $0x78] sm:$0xff]  }
   0x8   :  { %631 = vmatpush3.bf16.msra.mxu0 %v712_v6  ;;  %312 = vmatprep.subr.bf16.mxu1 %v770_v1  ;;  %v726_v21 = vld [vmem:[%s982_s1 + $0xb0] sm:$0xff]   ;;  %v729_v28 = vld [vmem:[%s982_s1 + $0xb8] sm:$0xff]   ;;  %v94_v29 = vcombine.high %v583_v23, %v583_v23  ;;  %v731_v33 = vld [vmem:[%s982_s1 + $0xc0] sm:$0xff]   ;;  %v101_v36 = vrot.slane %v583_v23, %v100_v32 }
   0x9   :  { %632 = vmatprep.subr.bf16.mxu0 %v713_v7  ;;  %v727_v22 = vld [vmem:[%s982_s1 + $0x30] sm:$0xff]   ;;  %v730_v31 = vld [vmem:[%s982_s1 + $0x38] sm:$0xff]   ;;  %v732_v34 = vld [vmem:[%s984_s3] sm:$0xff]  }
   0xa   :  { %v108_v35 = vrot.slane %v94_v29, %v100_v32  ;;  %v109_v39 = vcombine.high %v101_v36, %v101_v36  ;;  %v733_v40 = vld [vmem:[%s984_s3 + $0x8] sm:$0xff]  }
   0xb   :  { %313 = vmatpush1.bf16.msra.mxu1 %v714_v8 }
   0xc   :  { %633 = vmatpush3.bf16.msra.mxu0 %v715_v9  ;;  %314 = vmatprep.subr.bf16.mxu1 %v770_v1  ;;  %v110_v37 = vcombine.high %v108_v35, %v108_v35 }
   0xd   :  { %634 = vmatprep.subr.bf16.mxu0 %v716_v10  ;;  %300 = vmatprep.mubr.bf16.mxu0 %v108_v35 }
   0xe   :  { %609 = vmatprep.mubr.msk.bf16.mxu1 %vm264_vm0, %v110_v37 }
   0xf   :  { %315 = vmatpush1.bf16.msra.mxu1 %v717_v11 }
  0x10   :  { %635 = vmatpush3.bf16.msra.mxu0 %v718_v12  ;;  %316 = vmatprep.subr.bf16.mxu1 %v770_v1 }
  0x11   :  { %636 = vmatprep.subr.bf16.mxu0 %v719_v13 }
  0x13   :  { %317 = vmatpush1.bf16.msra.mxu1 %v720_v14 }
  0x14   :  { %637 = vmatpush3.bf16.msra.mxu0 %v721_v15  ;;  %318 = vmatprep.subr.bf16.mxu1 %v770_v1 }
  0x15   :  { %638 = vmatprep.subr.bf16.mxu0 %v722_v16 }
  0x17   :  { %319 = vmatpush1.bf16.msra.mxu1 %v723_v17 }
  0x18   :  { %639 = vmatpush3.bf16.msra.mxu0 %v724_v18  ;;  %320 = vmatprep.subr.bf16.mxu1 %v770_v1 }
  0x19   :  { %640 = vmatprep.subr.bf16.mxu0 %v725_v19 }
  0x1b   :  { %321 = vmatpush1.bf16.msra.mxu1 %v726_v21 }
  0x1c   :  { %641 = vmatpush3.bf16.msra.mxu0 %v727_v22  ;;  %322 = vmatprep.subr.bf16.mxu1 %v770_v1 }
  0x1d   :  { %642 = vmatprep.subr.bf16.mxu0 %v728_v24 }
  0x1f   :  { %323 = vmatpush1.bf16.msra.mxu1 %v729_v28 }
  0x20   :  { %643 = vmatpush3.bf16.msra.mxu0 %v730_v31  ;;  %324 = vmatprep.subr.bf16.mxu1 %v770_v1 }
  0x21   :  { %666 = vmatprep.subr.bf16.mxu0 %v772_v38 }
  0x23   :  { %301 = vmatmul.mubr.bf16.vlgmr.msra.gmra.mrb[0].mxu0 %v101_v36  ;;  %325 = vmatpush1.bf16.msra.mxu1 %v731_v33 }
  0x24   :  { %667 = vmatpush3.bf16.msra.mxu0 %v732_v34 }
  0x25   :  { %12 = vsyncpa [#allocation3], 0  ;;  %668 = vmatprep.subr.bf16.mxu0 %v772_v38  ;;  %686 = vmatprep.subr.bf16.mxu1 %v772_v38  ;;  %v734_v41 = vld [vmem:[%s984_s3 + $0x10] sm:$0xff]   ;;  %v735_v42 = vld [vmem:[%s984_s3 + $0x18] sm:$0xff]   ;;  %vm421_vm1 = vcmask 1043456   ;;  %vm773_vm2 = vmmov 0  }
  0x26   :  { %341 = vmatmul.mubr.bf16.vlgmr.msra.gmra.mrb[0].mxu1 %v109_v39  ;;  %v736_v43 = vld [vmem:[%s984_s3 + $0x20] sm:$0xff]   ;;  %v737_v44 = vld [vmem:[%s984_s3 + $0x28] sm:$0xff]   ;;  %v738_v45 = vld [vmem:[%s984_s3 + $0x30] sm:$0xff]   ;;  %682 = vmatprep.mubr.msk.bf16.mxu0 %vm773_vm2, %v772_v38  ;;  %vm417_vm3 = vcmask 982016   ;;  %vm522_vm4 = vcmask 1041408   ;;  %vm518_vm5 = vcmask 687104  }
  0x27   :  { %v739_v46 = vld [vmem:[%s984_s3 + $0x38] ss:$0 sps:$4 sm:$0xff]   ;;  %698 = vmatprep.mubr.msk.bf16.mxu1 %vm773_vm2, %v772_v38  ;;  %v740_v48 = vld [vmem:[%s986_s5] sm:$0xff]   ;;  %v741_v49 = vld [vmem:[%s986_s5 + $0x8] sm:$0xff]   ;;  %vm566_vm6 = vcmask 74752  }
  0x28   :  { %669 = vmatpush3.bf16.msra.mxu0 %v733_v40  ;;  %v423_v47 = vsel %vm421_vm1, %v739_v46, 0  ;;  %687 = vmatpush3.bf16.msra.mxu1 %v740_v48  ;;  %v742_v50 = vld [vmem:[%s986_s5 + $0x10] sm:$0xff]   ;;  %v743_v51 = vld [vmem:[%s986_s5 + $0x18] sm:$0xff]   ;;  %v582_v54 = vld [vmem:[%s983_s2] ss:$0 sm:$0xff] }
  0x29   :  { %670 = vmatprep.subr.bf16.mxu0 %v772_v38  ;;  %688 = vmatprep.subr.bf16.mxu1 %v772_v38  ;;  %v744_v2 = vld [vmem:[%s986_s5 + $0x20] sm:$0xff]   ;;  %v745_v3 = vld [vmem:[%s986_s5 + $0x28] ss:$0 sps:$4 sm:$0x33]   ;;  %s774_s5 = smov [#allocation2]  }
  0x2a   :  { %v524_v4 = vsel %vm522_vm4, %v745_v3, 0  ;;  %v610_v5 = vld [vmem:[%s985_s4] ss:$0 sm:$0xff]  ;;  %s574_s12 = sshll.u32 %s774_s5, 4  ;;  %s575_s12 = int_to_ptr.vmem [resolvable:$true] %s574_s12 }
  0x2b   :  { %v620_v13 = vld [vmem:[%s987_s6] ss:$0 sm:$0xff]  ;;  %s746_s4 = scalar_lea.vmem %s575_s12, 32  ;;  %p751_p1 = scmp.lt.s32.totalorder %s575_s12, %s575_s12 }
  0x2c   :  { %671 = vmatpush3.bf16.msra.mxu0 %v734_v41  ;;  %689 = vmatpush3.bf16.msra.mxu1 %v741_v49  ;;  %p747_p0 = scmp.ne.s32.totalorder %s575_s12, %s746_s4  ;;  %p752_p2 = scmp.lt.s32.totalorder %s746_s4, %s746_s4 }
  0x2d   :  { %672 = vmatprep.subr.bf16.mxu0 %v772_v38  ;;  %690 = vmatprep.subr.bf16.mxu1 %v772_v38 }
  0x2e   :  { %p753_p3 = por %p752_p2, %p751_p1 }
  0x30   :  { %673 = vmatpush3.bf16.msra.mxu0 %v735_v42  ;;  %691 = vmatpush3.bf16.msra.mxu1 %v742_v50  ;;  %p754_p4 = pnand %p753_p3, %p747_p0 }
  0x31   :  { %674 = vmatprep.subr.bf16.mxu0 %v772_v38  ;;  %692 = vmatprep.subr.bf16.mxu1 %v772_v38 }
  0x34   :  { %675 = vmatpush3.bf16.msra.mxu0 %v736_v43  ;;  %693 = vmatpush3.bf16.msra.mxu1 %v743_v51 }
  0x35   :  { %676 = vmatprep.subr.bf16.mxu0 %v772_v38  ;;  %694 = vmatprep.subr.bf16.mxu1 %v772_v38 }
  0x38   :  { %677 = vmatpush3.bf16.msra.mxu0 %v737_v44  ;;  %695 = vmatpush3.bf16.msra.mxu1 %v744_v2 }
  0x39   :  { %678 = vmatprep.subr.bf16.mxu0 %v772_v38  ;;  %696 = vmatprep.subr.bf16.mxu1 %v772_v38 }
  0x3c   :  { %679 = vmatpush3.bf16.msra.mxu0 %v738_v45  ;;  %697 = vmatpush3.bf16.msra.mxu1 %v524_v4 }
  0x3d   :  { %680 = vmatprep.subr.bf16.mxu0 %v772_v38 }
  0x40   :  { %681 = vmatpush3.bf16.msra.mxu0 %v423_v47 }
  0xf6   :  { %v644_v52 = vpop.f32.mrb[0].mxu0 }
  0xf7   :  { %v645_v53 = vpop.f32.mrb[1].mxu0 }
  0xf8   :  { %v646_v55 = vadd.f32 %v645_v53, %v644_v52  ;;  %v647_v56 = vpop.f32.mrb[2].mxu0 }
  0xf9   :  { %v648_v57 = vpop.f32.mrb[3].mxu0  ;;  %v342_v58 = vpop.f32.mrb[0].mxu1 }
  0xfa   :  { %v303_v59 = vadd.f32 %v646_v55, %v582_v54  ;;  %v344_v60 = vpop.f32.mrb[1].mxu1 }
  0xfb   :  { %v345_v61 = vpop.f32.mrb[2].mxu1 }
  0xfc   :  { %v343_v62 = vadd.f32 %v342_v58, %v303_v59  ;;  %v346_v63 = vpop.f32.mrb[3].mxu1 }
  0xfe   :  { %v348_v0 = vmax.f32 %v343_v62, 0.0 }
 0x100   :  { %v349_v1 = vpack.c.bf16 %v348_v0, %v348_v0 }
 0x102   :  { %683 = vmatmul.mubr.msk.bf16.vlgmr.msra.gmra.mrb[4].mxu0 %vm417_vm3, %v349_v1 }
 0x1d5   :  { %v459_v6 = vpop.f32.mrb[4].mxu0 }
 0x1d6   :  { %v460_v7 = vadd.f32 %v610_v5, %v459_v6  ;;  %v684_v8 = vpop.f32.mrb[5].mxu0 }
 0x1d7   :  { %v462_v9 = vpop.f32.mrb[6].mxu0 }
 0x1d8   :  { %v465_v10 = vmax.f32 %v460_v7, 0.0  ;;  %v685_v11 = vpop.f32.mrb[7].mxu0 }
 0x1da   :  { %v466_v12 = vpack.c.bf16 %v465_v10, %v465_v10 }
 0x1dc   :  { %699 = vmatmul.mubr.msk.bf16.vlgmr.msra.gmra.mrb[4].mxu1 %vm518_vm5, %v466_v12 }
 0x2af   :  { %v560_v14 = vpop.f32.mrb[4].mxu1 }
 0x2b0   :  { %v561_v15 = vadd.f32 %v620_v13, %v560_v14  ;;  %v700_v16 = vpop.f32.mrb[5].mxu1 }
 0x2b1   :  { %v563_v17 = vpop.f32.mrb[6].mxu1 }
 0x2b2   :  { %v701_v18 = vpop.f32.mrb[7].mxu1  ;;  %567 = vst.msk [vmem:[#allocation2] sm:$0x3] %vm566_vm6, %v561_v15 }
 0x2b3   :  { %757 = shalt.err (!%p754_p4)
}
 0x2b4   :  { %s758_s6 = scalar_lea.hbm %s988_s7, 32 }
 0x2b5   :  { %p759_p5 = scmp.ne.s32.totalorder %s988_s7, %s758_s6  ;;  %p762_p6 = scmp.lt.u32.totalorder %s758_s6, %s988_s7 }
 0x2b7   :  { %p764_p7 = pnand %p762_p6, %p759_p5 }
 0x2b9   :  { %767 = shalt.err (!%p764_p7)
}
 0x2ba   :  { %577 = dma.vmem_to_hbm [thread:$0]  %s575_s12, 32, %s988_s7, [#allocation3]  }
 0x2bb   :  { %768 = dma.done.wait [#allocation3], 32  }
 0x2bc   :  { %769 = vsyncadd [#allocation3], 4294967264 }
 0x2bd   :  { %581 = vsyncpa [#allocation3], 1 }

</bundles_post_ra>
